<compile_context>
chip_gen: v5e
topology: v5e:2x2
jax: 0.10.0
libtpu: 0.0.40
codegen_flags: <defaults>
</compile_context>

<pallas_src>
import jax
import jax.numpy as jnp
from jax.experimental import pallas as pl
from jax.experimental.pallas import tpu as pltpu


# ----------------------------------------------------------------------------
# Fused GRU + fc/tanh kernel.  Single grid step; everything VMEM-resident.
#   emb_ref : (T, B, E)   embedded inputs
#   wih_ref : (3, E, H)   input->hidden weights, gate-major, pre-transposed
#   whh_ref : (3, H, H)   hidden->hidden weights, gate-major, pre-transposed
#   bi_ref  : (3, 1, H)   [b_ir+b_hr, b_iz+b_hz, b_in]
#   bhn_ref : (1, H)      b_hn (must stay inside the r*(...) term)
#   wfc_ref : (H, D)      fc weight, pre-transposed
#   bfc_ref : (1, D)      fc bias
#   out_ref : (T, B, H)   all GRU outputs
#   hid_ref : (B, D)      tanh(fc(h_N))
# ----------------------------------------------------------------------------
def encoder_kernel(emb_ref, wih_ref, whh_ref, bi_ref, bhn_ref, wfc_ref, bfc_ref,
                   out_ref, hid_ref):
    T, B, E = emb_ref.shape
    H = whh_ref.shape[-1]

    # ---- hoisted input projection: one big matmul per gate, biases folded ----
    x2d = emb_ref[...].reshape(T * B, E)                                 # (T*B, E)
    gi_r = jnp.dot(x2d, wih_ref[0], preferred_element_type=jnp.float32) + bi_ref[0]
    gi_z = jnp.dot(x2d, wih_ref[1], preferred_element_type=jnp.float32) + bi_ref[1]
    gi_n = jnp.dot(x2d, wih_ref[2], preferred_element_type=jnp.float32) + bi_ref[2]

    # hoist recurrent weights / bias out of the loop (avoid repeated ref loads)
    w_hr = whh_ref[0]
    w_hz = whh_ref[1]
    w_hn = whh_ref[2]
    b_hn = bhn_ref[...]                                                  # (1, H)

    h = jnp.zeros((B, H), jnp.float32)

    # T is static & small -> unrolled at trace time.  Only the (B,H)@(H,H)
    # recurrent matmuls + gate math remain on the serial dependency chain.
    for t in range(T):
        lo = t * B
        gh_r = jnp.dot(h, w_hr, preferred_element_type=jnp.float32)
        gh_z = jnp.dot(h, w_hz, preferred_element_type=jnp.float32)
        gh_n = jnp.dot(h, w_hn, preferred_element_type=jnp.float32) + b_hn
        r = jax.nn.sigmoid(gi_r[lo:lo + B, :] + gh_r)
        z = jax.nn.sigmoid(gi_z[lo:lo + B, :] + gh_z)
        n = jnp.tanh(gi_n[lo:lo + B, :] + r * gh_n)
        h = (1.0 - z) * n + z * h
        out_ref[t] = h.astype(out_ref.dtype)          # store into resident block

    # ---- fused final projection: hidden = tanh(h_N @ W_fc^T + b_fc) ----
    hid_ref[...] = jnp.tanh(
        jnp.dot(h, wfc_ref[...], preferred_element_type=jnp.float32) + bfc_ref[...]
    ).astype(hid_ref.dtype)


def encoder_gru_fc(embedded, w_ih_g, w_hh_g, b_i, b_hn, w_fc_t, b_fc):
    """embedded: (T, B, E) f32 -> (outputs (T, B, H), hidden (B, D))."""
    T, B, E = embedded.shape
    H = w_hh_g.shape[-1]
    D = w_fc_t.shape[-1]
    return pl.pallas_call(
        encoder_kernel,
        out_shape=(
            jax.ShapeDtypeStruct((T, B, H), jnp.float32),
            jax.ShapeDtypeStruct((B, D), jnp.float32),
        ),
        grid_spec=pltpu.PrefetchScalarGridSpec(
            num_scalar_prefetch=0,
            grid=(1,),
            in_specs=[
                pl.BlockSpec((T, B, E), lambda i: (0, 0, 0)),   # embedded
                pl.BlockSpec((3, E, H), lambda i: (0, 0, 0)),   # W_ih (gate-major)
                pl.BlockSpec((3, H, H), lambda i: (0, 0, 0)),   # W_hh (gate-major)
                pl.BlockSpec((3, 1, H), lambda i: (0, 0, 0)),   # combined biases
                pl.BlockSpec((1, H), lambda i: (0, 0)),         # b_hn
                pl.BlockSpec((H, D), lambda i: (0, 0)),         # W_fc^T
                pl.BlockSpec((1, D), lambda i: (0, 0)),         # b_fc
            ],
            out_specs=[
                pl.BlockSpec((T, B, H), lambda i: (0, 0, 0)),   # GRU outputs
                pl.BlockSpec((B, D), lambda i: (0, 0)),         # tanh(fc(h_N))
            ],
        ),
        compiler_params=pltpu.CompilerParams(
            dimension_semantics=("arbitrary",)),
    )(embedded, w_ih_g, w_hh_g, b_i, b_hn, w_fc_t, b_fc)


# ----------------------------------------------------------------------------
# Encoder forward (unidirectional, eval mode).
# ----------------------------------------------------------------------------
def encoder_forward(src, kparams):
    # Embedding lookup (glue; gather stays in plain JAX).
    embedded = jnp.take(kparams["embedding"], src, axis=0)     # (T, B, E) f32
    # Dropout: identity (eval mode).
    outputs, hidden = encoder_gru_fc(
        embedded,
        kparams["w_ih_g"], kparams["w_hh_g"],
        kparams["b_i"], kparams["b_hn"],
        kparams["w_fc_t"], kparams["b_fc"],
    )
    return outputs, hidden


# ----------------------------------------------------------------------------
# Parameter handling: create PyTorch-layout params, then convert to the
# gate-major / pre-transposed / bias-folded layout the kernel expects.
# ----------------------------------------------------------------------------
def init_torch_params(key, input_dim, emb_dim, enc_hid_dim, dec_hid_dim):
    ks = jax.random.split(key, 7)
    s = 1.0 / jnp.sqrt(enc_hid_dim)
    return {
        # nn.Embedding(input_dim, emb_dim): weight (V, E) ~ N(0, 1)
        "embedding": jax.random.normal(ks[0], (input_dim, emb_dim), jnp.float32),
        # nn.GRU(emb_dim, enc_hid_dim): PyTorch layout (gate order r, z, n)
        "w_ih": jax.random.uniform(ks[1], (3 * enc_hid_dim, emb_dim),
                                   jnp.float32, -s, s),
        "w_hh": jax.random.uniform(ks[2], (3 * enc_hid_dim, enc_hid_dim),
                                   jnp.float32, -s, s),
        "b_ih": jax.random.uniform(ks[3], (3 * enc_hid_dim,), jnp.float32, -s, s),
        "b_hh": jax.random.uniform(ks[4], (3 * enc_hid_dim,), jnp.float32, -s, s),
        # nn.Linear(enc_hid_dim, dec_hid_dim): weight (D, H), bias (D,)
        "w_fc": jax.random.uniform(ks[5], (dec_hid_dim, enc_hid_dim),
                                   jnp.float32, -s, s),
        "b_fc": jax.random.uniform(ks[6], (dec_hid_dim,), jnp.float32, -s, s),
    }


def prepare_kernel_params(p):
    H = p["w_hh"].shape[1]
    E = p["w_ih"].shape[1]
    D = p["w_fc"].shape[0]
    w_ih_g = p["w_ih"].reshape(3, H, E).transpose(0, 2, 1)   # (3, E, H)
    w_hh_g = p["w_hh"].reshape(3, H, H).transpose(0, 2, 1)   # (3, H, H)
    b_ih = p["b_ih"].reshape(3, 1, H)
    b_hh = p["b_hh"].reshape(3, 1, H)
    # fold b_ir+b_hr, b_iz+b_hz; keep b_in alone; b_hn stays separate.
    b_i = jnp.stack([b_ih[0] + b_hh[0], b_ih[1] + b_hh[1], b_ih[2]], axis=0)
    b_hn = b_hh[2]                                            # (1, H)
    return {
        "embedding": p["embedding"],
        "w_ih_g": w_ih_g,
        "w_hh_g": w_hh_g,
        "b_i": b_i,
        "b_hn": b_hn,
        "w_fc_t": p["w_fc"].T,                                # (H, D)
        "b_fc": p["b_fc"].reshape(1, D),
    }


# ----------------------------------------------------------------------------
# Pure-JAX reference (PyTorch GRU semantics) for correctness checking.
# ----------------------------------------------------------------------------
def encoder_reference(src, p):
    emb = jnp.take(p["embedding"], src, axis=0)               # (T, B, E)
    H = p["w_hh"].shape[1]
    hp = jax.lax.Precision.HIGHEST

    def step(h, x):
        gi = jnp.dot(x, p["w_ih"].T, precision=hp) + p["b_ih"]
        gh = jnp.dot(h, p["w_hh"].T, precision=hp) + p["b_hh"]
        i_r, i_z, i_n = gi[:, :H], gi[:, H:2 * H], gi[:, 2 * H:]
        h_r, h_z, h_n = gh[:, :H], gh[:, H:2 * H], gh[:, 2 * H:]
        r = jax.nn.sigmoid(i_r + h_r)
        z = jax.nn.sigmoid(i_z + h_z)
        n = jnp.tanh(i_n + r * h_n)
        h_new = (1.0 - z) * n + z * h
        return h_new, h_new

    B = src.shape[1]
    h0 = jnp.zeros((B, H), jnp.float32)
    h_last, outs = jax.lax.scan(step, h0, emb)
    hidden = jnp.tanh(jnp.dot(h_last, p["w_fc"].T, precision=hp) + p["b_fc"])
    return outs, hidden


if __name__ == "__main__":
    # Small, module-consistent shapes.
    INPUT_DIM = 32    # vocab size
    EMB_DIM = 16
    ENC_HID_DIM = 32
    DEC_HID_DIM = 32
    T, B = 8, 8       # (seq_len, batch), time-major

    key = jax.random.PRNGKey(0)
    k_param, k_src = jax.random.split(key)
    torch_params = init_torch_params(k_param, INPUT_DIM, EMB_DIM,
                                     ENC_HID_DIM, DEC_HID_DIM)
    kparams = prepare_kernel_params(torch_params)
    src = jax.random.randint(k_src, (T, B), 0, INPUT_DIM, dtype=jnp.int32)

    outputs, hidden = jax.jit(encoder_forward)(src, kparams)
    jax.block_until_ready((outputs, hidden))

    assert outputs.shape == (T, B, ENC_HID_DIM)
    assert hidden.shape == (B, DEC_HID_DIM)

    # Correctness vs. pure-JAX PyTorch-semantics reference.
    ref_out, ref_hid = jax.jit(encoder_reference)(src, torch_params)
    assert jnp.allclose(outputs, ref_out, atol=1e-4, rtol=1e-4)
    assert jnp.allclose(hidden, ref_hid, atol=1e-4, rtol=1e-4)

    # TODO(synk): bidirectional=True branch and train-mode dropout not implemented
    # (module defaults to bidirectional=False; dropout is identity in eval()).
    print("KERNEL_OK")
</pallas_src>

<mosaic_0001>
module attributes {stable_mosaic.version = 11 : i64} {
  func.func @encoder_kernel(%arg0: i32, %arg1: memref<8x8x16xf32, #tpu.memory_space<vmem>>, %arg2: memref<3x16x32xf32, #tpu.memory_space<vmem>>, %arg3: memref<3x32x32xf32, #tpu.memory_space<vmem>>, %arg4: memref<3x1x32xf32, #tpu.memory_space<vmem>>, %arg5: memref<1x32xf32, #tpu.memory_space<vmem>>, %arg6: memref<32x32xf32, #tpu.memory_space<vmem>>, %arg7: memref<1x32xf32, #tpu.memory_space<vmem>>, %arg8: memref<8x8x32xf32, #tpu.memory_space<vmem>>, %arg9: memref<8x32xf32, #tpu.memory_space<vmem>>) attributes {dimension_semantics = [#tpu.dimension_semantics<arbitrary>], iteration_bounds = array<i64: 1>, scalar_prefetch = 0 : i64, scratch_operands = 0 : i64, tpu.core_type = #tpu.core_type<tc>, window_params = [{pipeline_mode = #tpu.pipeline_mode<synchronous>, transform_indices = @transform_0, window_bounds = array<i64: 8, 8, 16>}, {pipeline_mode = #tpu.pipeline_mode<synchronous>, transform_indices = @transform_1, window_bounds = array<i64: 3, 16, 32>}, {pipeline_mode = #tpu.pipeline_mode<synchronous>, transform_indices = @transform_2, window_bounds = array<i64: 3, 32, 32>}, {pipeline_mode = #tpu.pipeline_mode<synchronous>, transform_indices = @transform_3, window_bounds = array<i64: 3, 1, 32>}, {pipeline_mode = #tpu.pipeline_mode<synchronous>, transform_indices = @transform_4, window_bounds = array<i64: 1, 32>}, {pipeline_mode = #tpu.pipeline_mode<synchronous>, transform_indices = @transform_5, window_bounds = array<i64: 32, 32>}, {pipeline_mode = #tpu.pipeline_mode<synchronous>, transform_indices = @transform_6, window_bounds = array<i64: 1, 32>}, {pipeline_mode = #tpu.pipeline_mode<synchronous>, transform_indices = @transform_7, window_bounds = array<i64: 8, 8, 32>}, {pipeline_mode = #tpu.pipeline_mode<synchronous>, transform_indices = @transform_8, window_bounds = array<i64: 8, 32>}]} {
    %c0 = arith.constant 0 : index
    %c0_0 = arith.constant 0 : index
    %c0_1 = arith.constant 0 : index
    %0 = vector.load %arg1[%c0, %c0_0, %c0_1] : memref<8x8x16xf32, #tpu.memory_space<vmem>>, vector<8x8x16xf32>
    %1 = vector.shape_cast %0 : vector<8x8x16xf32> to vector<64x16xf32>
    %c0_2 = arith.constant 0 : index
    %c0_3 = arith.constant 0 : index
    %c0_4 = arith.constant 0 : index
    %2 = vector.load %arg2[%c0_2, %c0_3, %c0_4] : memref<3x16x32xf32, #tpu.memory_space<vmem>>, vector<1x16x32xf32>
    %3 = vector.shape_cast %2 : vector<1x16x32xf32> to vector<16x32xf32>
    %cst = arith.constant dense<0.000000e+00> : vector<64x32xf32>
    %4 = tpu.matmul %1, %3, %cst {dimension_numbers = #tpu.dot_dimension_numbers<[1], [0], [0], [1], [0, 0, 1, 1], [], []>} : vector<64x16xf32>, vector<16x32xf32>, vector<64x32xf32> -> vector<64x32xf32>
    %c0_5 = arith.constant 0 : index
    %c0_6 = arith.constant 0 : index
    %c0_7 = arith.constant 0 : index
    %5 = vector.load %arg4[%c0_5, %c0_6, %c0_7] : memref<3x1x32xf32, #tpu.memory_space<vmem>>, vector<1x1x32xf32>
    %6 = vector.shape_cast %5 : vector<1x1x32xf32> to vector<1x32xf32>
    %7 = vector.broadcast %6 : vector<1x32xf32> to vector<64x32xf32>
    %8 = arith.addf %4, %7 : vector<64x32xf32>
    %c1 = arith.constant 1 : index
    %c0_8 = arith.constant 0 : index
    %c0_9 = arith.constant 0 : index
    %9 = vector.load %arg2[%c1, %c0_8, %c0_9] : memref<3x16x32xf32, #tpu.memory_space<vmem>>, vector<1x16x32xf32>
    %10 = vector.shape_cast %9 : vector<1x16x32xf32> to vector<16x32xf32>
    %cst_10 = arith.constant dense<0.000000e+00> : vector<64x32xf32>
    %11 = tpu.matmul %1, %10, %cst_10 {dimension_numbers = #tpu.dot_dimension_numbers<[1], [0], [0], [1], [0, 0, 1, 1], [], []>} : vector<64x16xf32>, vector<16x32xf32>, vector<64x32xf32> -> vector<64x32xf32>
    %c1_11 = arith.constant 1 : index
    %c0_12 = arith.constant 0 : index
    %c0_13 = arith.constant 0 : index
    %12 = vector.load %arg4[%c1_11, %c0_12, %c0_13] : memref<3x1x32xf32, #tpu.memory_space<vmem>>, vector<1x1x32xf32>
    %13 = vector.shape_cast %12 : vector<1x1x32xf32> to vector<1x32xf32>
    %14 = vector.broadcast %13 : vector<1x32xf32> to vector<64x32xf32>
    %15 = arith.addf %11, %14 : vector<64x32xf32>
    %c2 = arith.constant 2 : index
    %c0_14 = arith.constant 0 : index
    %c0_15 = arith.constant 0 : index
    %16 = vector.load %arg2[%c2, %c0_14, %c0_15] : memref<3x16x32xf32, #tpu.memory_space<vmem>>, vector<1x16x32xf32>
    %17 = vector.shape_cast %16 : vector<1x16x32xf32> to vector<16x32xf32>
    %cst_16 = arith.constant dense<0.000000e+00> : vector<64x32xf32>
    %18 = tpu.matmul %1, %17, %cst_16 {dimension_numbers = #tpu.dot_dimension_numbers<[1], [0], [0], [1], [0, 0, 1, 1], [], []>} : vector<64x16xf32>, vector<16x32xf32>, vector<64x32xf32> -> vector<64x32xf32>
    %c2_17 = arith.constant 2 : index
    %c0_18 = arith.constant 0 : index
    %c0_19 = arith.constant 0 : index
    %19 = vector.load %arg4[%c2_17, %c0_18, %c0_19] : memref<3x1x32xf32, #tpu.memory_space<vmem>>, vector<1x1x32xf32>
    %20 = vector.shape_cast %19 : vector<1x1x32xf32> to vector<1x32xf32>
    %21 = vector.broadcast %20 : vector<1x32xf32> to vector<64x32xf32>
    %22 = arith.addf %18, %21 : vector<64x32xf32>
    %c0_20 = arith.constant 0 : index
    %c0_21 = arith.constant 0 : index
    %c0_22 = arith.constant 0 : index
    %23 = vector.load %arg3[%c0_20, %c0_21, %c0_22] : memref<3x32x32xf32, #tpu.memory_space<vmem>>, vector<1x32x32xf32>
    %24 = vector.shape_cast %23 : vector<1x32x32xf32> to vector<32x32xf32>
    %c1_23 = arith.constant 1 : index
    %c0_24 = arith.constant 0 : index
    %c0_25 = arith.constant 0 : index
    %25 = vector.load %arg3[%c1_23, %c0_24, %c0_25] : memref<3x32x32xf32, #tpu.memory_space<vmem>>, vector<1x32x32xf32>
    %26 = vector.shape_cast %25 : vector<1x32x32xf32> to vector<32x32xf32>
    %c2_26 = arith.constant 2 : index
    %c0_27 = arith.constant 0 : index
    %c0_28 = arith.constant 0 : index
    %27 = vector.load %arg3[%c2_26, %c0_27, %c0_28] : memref<3x32x32xf32, #tpu.memory_space<vmem>>, vector<1x32x32xf32>
    %28 = vector.shape_cast %27 : vector<1x32x32xf32> to vector<32x32xf32>
    %c0_29 = arith.constant 0 : index
    %c0_30 = arith.constant 0 : index
    %29 = vector.load %arg5[%c0_29, %c0_30] : memref<1x32xf32, #tpu.memory_space<vmem>>, vector<1x32xf32>
    %cst_31 = arith.constant 0.000000e+00 : f32
    %30 = vector.broadcast %cst_31 : f32 to vector<8x32xf32>
    %cst_32 = arith.constant dense<0.000000e+00> : vector<8x32xf32>
    %31 = tpu.matmul %30, %24, %cst_32 {dimension_numbers = #tpu.dot_dimension_numbers<[1], [0], [0], [1], [0, 0, 1, 1], [], []>} : vector<8x32xf32>, vector<32x32xf32>, vector<8x32xf32> -> vector<8x32xf32>
    %cst_33 = arith.constant dense<0.000000e+00> : vector<8x32xf32>
    %32 = tpu.matmul %30, %26, %cst_33 {dimension_numbers = #tpu.dot_dimension_numbers<[1], [0], [0], [1], [0, 0, 1, 1], [], []>} : vector<8x32xf32>, vector<32x32xf32>, vector<8x32xf32> -> vector<8x32xf32>
    %cst_34 = arith.constant dense<0.000000e+00> : vector<8x32xf32>
    %33 = tpu.matmul %30, %28, %cst_34 {dimension_numbers = #tpu.dot_dimension_numbers<[1], [0], [0], [1], [0, 0, 1, 1], [], []>} : vector<8x32xf32>, vector<32x32xf32>, vector<8x32xf32> -> vector<8x32xf32>
    %34 = vector.broadcast %29 : vector<1x32xf32> to vector<8x32xf32>
    %35 = arith.addf %33, %34 : vector<8x32xf32>
    %36 = vector.extract_strided_slice %8 {offsets = [0, 0], sizes = [8, 32], strides = [1, 1]} : vector<64x32xf32> to vector<8x32xf32>
    %37 = arith.addf %36, %31 : vector<8x32xf32>
    %38 = arith.negf %37 : vector<8x32xf32>
    %39 = math.exp %38 : vector<8x32xf32>
    %cst_35 = arith.constant 1.000000e+00 : f32
    %40 = vector.broadcast %cst_35 : f32 to vector<8x32xf32>
    %41 = arith.addf %40, %39 : vector<8x32xf32>
    %42 = arith.divf %40, %41 : vector<8x32xf32>
    %43 = vector.extract_strided_slice %15 {offsets = [0, 0], sizes = [8, 32], strides = [1, 1]} : vector<64x32xf32> to vector<8x32xf32>
    %44 = arith.addf %43, %32 : vector<8x32xf32>
    %45 = arith.negf %44 : vector<8x32xf32>
    %46 = math.exp %45 : vector<8x32xf32>
    %cst_36 = arith.constant 1.000000e+00 : f32
    %47 = vector.broadcast %cst_36 : f32 to vector<8x32xf32>
    %48 = arith.addf %47, %46 : vector<8x32xf32>
    %49 = arith.divf %47, %48 : vector<8x32xf32>
    %50 = vector.extract_strided_slice %22 {offsets = [0, 0], sizes = [8, 32], strides = [1, 1]} : vector<64x32xf32> to vector<8x32xf32>
    %51 = arith.mulf %42, %35 : vector<8x32xf32>
    %52 = arith.addf %50, %51 : vector<8x32xf32>
    %53 = math.tanh %52 : vector<8x32xf32>
    %cst_37 = arith.constant 1.000000e+00 : f32
    %54 = vector.broadcast %cst_37 : f32 to vector<8x32xf32>
    %55 = arith.subf %54, %49 : vector<8x32xf32>
    %56 = arith.mulf %55, %53 : vector<8x32xf32>
    %57 = arith.mulf %49, %30 : vector<8x32xf32>
    %58 = arith.addf %56, %57 : vector<8x32xf32>
    %c0_38 = arith.constant 0 : index
    %c0_39 = arith.constant 0 : index
    %c0_40 = arith.constant 0 : index
    %59 = vector.load %arg8[%c0_38, %c0_39, %c0_40] : memref<8x8x32xf32, #tpu.memory_space<vmem>>, vector<1x8x32xf32>
    %60 = vector.shape_cast %59 : vector<1x8x32xf32> to vector<8x32xf32>
    %61 = vector.shape_cast %58 : vector<8x32xf32> to vector<1x8x32xf32>
    tpu.vector_store %arg8[%c0_38, %c0_39, %c0_40], %61 {strides = array<i32>} : memref<8x8x32xf32, #tpu.memory_space<vmem>>, vector<1x8x32xf32>,
    %cst_41 = arith.constant dense<0.000000e+00> : vector<8x32xf32>
    %62 = tpu.matmul %58, %24, %cst_41 {dimension_numbers = #tpu.dot_dimension_numbers<[1], [0], [0], [1], [0, 0, 1, 1], [], []>} : vector<8x32xf32>, vector<32x32xf32>, vector<8x32xf32> -> vector<8x32xf32>
    %cst_42 = arith.constant dense<0.000000e+00> : vector<8x32xf32>
    %63 = tpu.matmul %58, %26, %cst_42 {dimension_numbers = #tpu.dot_dimension_numbers<[1], [0], [0], [1], [0, 0, 1, 1], [], []>} : vector<8x32xf32>, vector<32x32xf32>, vector<8x32xf32> -> vector<8x32xf32>
    %cst_43 = arith.constant dense<0.000000e+00> : vector<8x32xf32>
    %64 = tpu.matmul %58, %28, %cst_43 {dimension_numbers = #tpu.dot_dimension_numbers<[1], [0], [0], [1], [0, 0, 1, 1], [], []>} : vector<8x32xf32>, vector<32x32xf32>, vector<8x32xf32> -> vector<8x32xf32>
    %65 = vector.broadcast %29 : vector<1x32xf32> to vector<8x32xf32>
    %66 = arith.addf %64, %65 : vector<8x32xf32>
    %67 = vector.extract_strided_slice %8 {offsets = [8, 0], sizes = [8, 32], strides = [1, 1]} : vector<64x32xf32> to vector<8x32xf32>
    %68 = arith.addf %67, %62 : vector<8x32xf32>
    %69 = arith.negf %68 : vector<8x32xf32>
    %70 = math.exp %69 : vector<8x32xf32>
    %cst_44 = arith.constant 1.000000e+00 : f32
    %71 = vector.broadcast %cst_44 : f32 to vector<8x32xf32>
    %72 = arith.addf %71, %70 : vector<8x32xf32>
    %73 = arith.divf %71, %72 : vector<8x32xf32>
    %74 = vector.extract_strided_slice %15 {offsets = [8, 0], sizes = [8, 32], strides = [1, 1]} : vector<64x32xf32> to vector<8x32xf32>
    %75 = arith.addf %74, %63 : vector<8x32xf32>
    %76 = arith.negf %75 : vector<8x32xf32>
    %77 = math.exp %76 : vector<8x32xf32>
    %cst_45 = arith.constant 1.000000e+00 : f32
    %78 = vector.broadcast %cst_45 : f32 to vector<8x32xf32>
    %79 = arith.addf %78, %77 : vector<8x32xf32>
    %80 = arith.divf %78, %79 : vector<8x32xf32>
    %81 = vector.extract_strided_slice %22 {offsets = [8, 0], sizes = [8, 32], strides = [1, 1]} : vector<64x32xf32> to vector<8x32xf32>
    %82 = arith.mulf %73, %66 : vector<8x32xf32>
    %83 = arith.addf %81, %82 : vector<8x32xf32>
    %84 = math.tanh %83 : vector<8x32xf32>
    %cst_46 = arith.constant 1.000000e+00 : f32
    %85 = vector.broadcast %cst_46 : f32 to vector<8x32xf32>
    %86 = arith.subf %85, %80 : vector<8x32xf32>
    %87 = arith.mulf %86, %84 : vector<8x32xf32>
    %88 = arith.mulf %80, %58 : vector<8x32xf32>
    %89 = arith.addf %87, %88 : vector<8x32xf32>
    %c1_47 = arith.constant 1 : index
    %c0_48 = arith.constant 0 : index
    %c0_49 = arith.constant 0 : index
    %90 = vector.load %arg8[%c1_47, %c0_48, %c0_49] : memref<8x8x32xf32, #tpu.memory_space<vmem>>, vector<1x8x32xf32>
    %91 = vector.shape_cast %90 : vector<1x8x32xf32> to vector<8x32xf32>
    %92 = vector.shape_cast %89 : vector<8x32xf32> to vector<1x8x32xf32>
    tpu.vector_store %arg8[%c1_47, %c0_48, %c0_49], %92 {strides = array<i32>} : memref<8x8x32xf32, #tpu.memory_space<vmem>>, vector<1x8x32xf32>,
    %cst_50 = arith.constant dense<0.000000e+00> : vector<8x32xf32>
    %93 = tpu.matmul %89, %24, %cst_50 {dimension_numbers = #tpu.dot_dimension_numbers<[1], [0], [0], [1], [0, 0, 1, 1], [], []>} : vector<8x32xf32>, vector<32x32xf32>, vector<8x32xf32> -> vector<8x32xf32>
    %cst_51 = arith.constant dense<0.000000e+00> : vector<8x32xf32>
    %94 = tpu.matmul %89, %26, %cst_51 {dimension_numbers = #tpu.dot_dimension_numbers<[1], [0], [0], [1], [0, 0, 1, 1], [], []>} : vector<8x32xf32>, vector<32x32xf32>, vector<8x32xf32> -> vector<8x32xf32>
    %cst_52 = arith.constant dense<0.000000e+00> : vector<8x32xf32>
    %95 = tpu.matmul %89, %28, %cst_52 {dimension_numbers = #tpu.dot_dimension_numbers<[1], [0], [0], [1], [0, 0, 1, 1], [], []>} : vector<8x32xf32>, vector<32x32xf32>, vector<8x32xf32> -> vector<8x32xf32>
    %96 = vector.broadcast %29 : vector<1x32xf32> to vector<8x32xf32>
    %97 = arith.addf %95, %96 : vector<8x32xf32>
    %98 = vector.extract_strided_slice %8 {offsets = [16, 0], sizes = [8, 32], strides = [1, 1]} : vector<64x32xf32> to vector<8x32xf32>
    %99 = arith.addf %98, %93 : vector<8x32xf32>
    %100 = arith.negf %99 : vector<8x32xf32>
    %101 = math.exp %100 : vector<8x32xf32>
    %cst_53 = arith.constant 1.000000e+00 : f32
    %102 = vector.broadcast %cst_53 : f32 to vector<8x32xf32>
    %103 = arith.addf %102, %101 : vector<8x32xf32>
    %104 = arith.divf %102, %103 : vector<8x32xf32>
    %105 = vector.extract_strided_slice %15 {offsets = [16, 0], sizes = [8, 32], strides = [1, 1]} : vector<64x32xf32> to vector<8x32xf32>
    %106 = arith.addf %105, %94 : vector<8x32xf32>
    %107 = arith.negf %106 : vector<8x32xf32>
    %108 = math.exp %107 : vector<8x32xf32>
    %cst_54 = arith.constant 1.000000e+00 : f32
    %109 = vector.broadcast %cst_54 : f32 to vector<8x32xf32>
    %110 = arith.addf %109, %108 : vector<8x32xf32>
    %111 = arith.divf %109, %110 : vector<8x32xf32>
    %112 = vector.extract_strided_slice %22 {offsets = [16, 0], sizes = [8, 32], strides = [1, 1]} : vector<64x32xf32> to vector<8x32xf32>
    %113 = arith.mulf %104, %97 : vector<8x32xf32>
    %114 = arith.addf %112, %113 : vector<8x32xf32>
    %115 = math.tanh %114 : vector<8x32xf32>
    %cst_55 = arith.constant 1.000000e+00 : f32
    %116 = vector.broadcast %cst_55 : f32 to vector<8x32xf32>
    %117 = arith.subf %116, %111 : vector<8x32xf32>
    %118 = arith.mulf %117, %115 : vector<8x32xf32>
    %119 = arith.mulf %111, %89 : vector<8x32xf32>
    %120 = arith.addf %118, %119 : vector<8x32xf32>
    %c2_56 = arith.constant 2 : index
    %c0_57 = arith.constant 0 : index
    %c0_58 = arith.constant 0 : index
    %121 = vector.load %arg8[%c2_56, %c0_57, %c0_58] : memref<8x8x32xf32, #tpu.memory_space<vmem>>, vector<1x8x32xf32>
    %122 = vector.shape_cast %121 : vector<1x8x32xf32> to vector<8x32xf32>
    %123 = vector.shape_cast %120 : vector<8x32xf32> to vector<1x8x32xf32>
    tpu.vector_store %arg8[%c2_56, %c0_57, %c0_58], %123 {strides = array<i32>} : memref<8x8x32xf32, #tpu.memory_space<vmem>>, vector<1x8x32xf32>,
    %cst_59 = arith.constant dense<0.000000e+00> : vector<8x32xf32>
    %124 = tpu.matmul %120, %24, %cst_59 {dimension_numbers = #tpu.dot_dimension_numbers<[1], [0], [0], [1], [0, 0, 1, 1], [], []>} : vector<8x32xf32>, vector<32x32xf32>, vector<8x32xf32> -> vector<8x32xf32>
    %cst_60 = arith.constant dense<0.000000e+00> : vector<8x32xf32>
    %125 = tpu.matmul %120, %26, %cst_60 {dimension_numbers = #tpu.dot_dimension_numbers<[1], [0], [0], [1], [0, 0, 1, 1], [], []>} : vector<8x32xf32>, vector<32x32xf32>, vector<8x32xf32> -> vector<8x32xf32>
    %cst_61 = arith.constant dense<0.000000e+00> : vector<8x32xf32>
    %126 = tpu.matmul %120, %28, %cst_61 {dimension_numbers = #tpu.dot_dimension_numbers<[1], [0], [0], [1], [0, 0, 1, 1], [], []>} : vector<8x32xf32>, vector<32x32xf32>, vector<8x32xf32> -> vector<8x32xf32>
    %127 = vector.broadcast %29 : vector<1x32xf32> to vector<8x32xf32>
    %128 = arith.addf %126, %127 : vector<8x32xf32>
    %129 = vector.extract_strided_slice %8 {offsets = [24, 0], sizes = [8, 32], strides = [1, 1]} : vector<64x32xf32> to vector<8x32xf32>
    %130 = arith.addf %129, %124 : vector<8x32xf32>
    %131 = arith.negf %130 : vector<8x32xf32>
    %132 = math.exp %131 : vector<8x32xf32>
    %cst_62 = arith.constant 1.000000e+00 : f32
    %133 = vector.broadcast %cst_62 : f32 to vector<8x32xf32>
    %134 = arith.addf %133, %132 : vector<8x32xf32>
    %135 = arith.divf %133, %134 : vector<8x32xf32>
    %136 = vector.extract_strided_slice %15 {offsets = [24, 0], sizes = [8, 32], strides = [1, 1]} : vector<64x32xf32> to vector<8x32xf32>
    %137 = arith.addf %136, %125 : vector<8x32xf32>
    %138 = arith.negf %137 : vector<8x32xf32>
    %139 = math.exp %138 : vector<8x32xf32>
    %cst_63 = arith.constant 1.000000e+00 : f32
    %140 = vector.broadcast %cst_63 : f32 to vector<8x32xf32>
    %141 = arith.addf %140, %139 : vector<8x32xf32>
    %142 = arith.divf %140, %141 : vector<8x32xf32>
    %143 = vector.extract_strided_slice %22 {offsets = [24, 0], sizes = [8, 32], strides = [1, 1]} : vector<64x32xf32> to vector<8x32xf32>
    %144 = arith.mulf %135, %128 : vector<8x32xf32>
    %145 = arith.addf %143, %144 : vector<8x32xf32>
    %146 = math.tanh %145 : vector<8x32xf32>
    %cst_64 = arith.constant 1.000000e+00 : f32
    %147 = vector.broadcast %cst_64 : f32 to vector<8x32xf32>
    %148 = arith.subf %147, %142 : vector<8x32xf32>
    %149 = arith.mulf %148, %146 : vector<8x32xf32>
    %150 = arith.mulf %142, %120 : vector<8x32xf32>
    %151 = arith.addf %149, %150 : vector<8x32xf32>
    %c3 = arith.constant 3 : index
    %c0_65 = arith.constant 0 : index
    %c0_66 = arith.constant 0 : index
    %152 = vector.load %arg8[%c3, %c0_65, %c0_66] : memref<8x8x32xf32, #tpu.memory_space<vmem>>, vector<1x8x32xf32>
    %153 = vector.shape_cast %152 : vector<1x8x32xf32> to vector<8x32xf32>
    %154 = vector.shape_cast %151 : vector<8x32xf32> to vector<1x8x32xf32>
    tpu.vector_store %arg8[%c3, %c0_65, %c0_66], %154 {strides = array<i32>} : memref<8x8x32xf32, #tpu.memory_space<vmem>>, vector<1x8x32xf32>,
    %cst_67 = arith.constant dense<0.000000e+00> : vector<8x32xf32>
    %155 = tpu.matmul %151, %24, %cst_67 {dimension_numbers = #tpu.dot_dimension_numbers<[1], [0], [0], [1], [0, 0, 1, 1], [], []>} : vector<8x32xf32>, vector<32x32xf32>, vector<8x32xf32> -> vector<8x32xf32>
    %cst_68 = arith.constant dense<0.000000e+00> : vector<8x32xf32>
    %156 = tpu.matmul %151, %26, %cst_68 {dimension_numbers = #tpu.dot_dimension_numbers<[1], [0], [0], [1], [0, 0, 1, 1], [], []>} : vector<8x32xf32>, vector<32x32xf32>, vector<8x32xf32> -> vector<8x32xf32>
    %cst_69 = arith.constant dense<0.000000e+00> : vector<8x32xf32>
    %157 = tpu.matmul %151, %28, %cst_69 {dimension_numbers = #tpu.dot_dimension_numbers<[1], [0], [0], [1], [0, 0, 1, 1], [], []>} : vector<8x32xf32>, vector<32x32xf32>, vector<8x32xf32> -> vector<8x32xf32>
    %158 = vector.broadcast %29 : vector<1x32xf32> to vector<8x32xf32>
    %159 = arith.addf %157, %158 : vector<8x32xf32>
    %160 = vector.extract_strided_slice %8 {offsets = [32, 0], sizes = [8, 32], strides = [1, 1]} : vector<64x32xf32> to vector<8x32xf32>
    %161 = arith.addf %160, %155 : vector<8x32xf32>
    %162 = arith.negf %161 : vector<8x32xf32>
    %163 = math.exp %162 : vector<8x32xf32>
    %cst_70 = arith.constant 1.000000e+00 : f32
    %164 = vector.broadcast %cst_70 : f32 to vector<8x32xf32>
    %165 = arith.addf %164, %163 : vector<8x32xf32>
    %166 = arith.divf %164, %165 : vector<8x32xf32>
    %167 = vector.extract_strided_slice %15 {offsets = [32, 0], sizes = [8, 32], strides = [1, 1]} : vector<64x32xf32> to vector<8x32xf32>
    %168 = arith.addf %167, %156 : vector<8x32xf32>
    %169 = arith.negf %168 : vector<8x32xf32>
    %170 = math.exp %169 : vector<8x32xf32>
    %cst_71 = arith.constant 1.000000e+00 : f32
    %171 = vector.broadcast %cst_71 : f32 to vector<8x32xf32>
    %172 = arith.addf %171, %170 : vector<8x32xf32>
    %173 = arith.divf %171, %172 : vector<8x32xf32>
    %174 = vector.extract_strided_slice %22 {offsets = [32, 0], sizes = [8, 32], strides = [1, 1]} : vector<64x32xf32> to vector<8x32xf32>
    %175 = arith.mulf %166, %159 : vector<8x32xf32>
    %176 = arith.addf %174, %175 : vector<8x32xf32>
    %177 = math.tanh %176 : vector<8x32xf32>
    %cst_72 = arith.constant 1.000000e+00 : f32
    %178 = vector.broadcast %cst_72 : f32 to vector<8x32xf32>
    %179 = arith.subf %178, %173 : vector<8x32xf32>
    %180 = arith.mulf %179, %177 : vector<8x32xf32>
    %181 = arith.mulf %173, %151 : vector<8x32xf32>
    %182 = arith.addf %180, %181 : vector<8x32xf32>
    %c4 = arith.constant 4 : index
    %c0_73 = arith.constant 0 : index
    %c0_74 = arith.constant 0 : index
    %183 = vector.load %arg8[%c4, %c0_73, %c0_74] : memref<8x8x32xf32, #tpu.memory_space<vmem>>, vector<1x8x32xf32>
    %184 = vector.shape_cast %183 : vector<1x8x32xf32> to vector<8x32xf32>
    %185 = vector.shape_cast %182 : vector<8x32xf32> to vector<1x8x32xf32>
    tpu.vector_store %arg8[%c4, %c0_73, %c0_74], %185 {strides = array<i32>} : memref<8x8x32xf32, #tpu.memory_space<vmem>>, vector<1x8x32xf32>,
    %cst_75 = arith.constant dense<0.000000e+00> : vector<8x32xf32>
    %186 = tpu.matmul %182, %24, %cst_75 {dimension_numbers = #tpu.dot_dimension_numbers<[1], [0], [0], [1], [0, 0, 1, 1], [], []>} : vector<8x32xf32>, vector<32x32xf32>, vector<8x32xf32> -> vector<8x32xf32>
    %cst_76 = arith.constant dense<0.000000e+00> : vector<8x32xf32>
    %187 = tpu.matmul %182, %26, %cst_76 {dimension_numbers = #tpu.dot_dimension_numbers<[1], [0], [0], [1], [0, 0, 1, 1], [], []>} : vector<8x32xf32>, vector<32x32xf32>, vector<8x32xf32> -> vector<8x32xf32>
    %cst_77 = arith.constant dense<0.000000e+00> : vector<8x32xf32>
    %188 = tpu.matmul %182, %28, %cst_77 {dimension_numbers = #tpu.dot_dimension_numbers<[1], [0], [0], [1], [0, 0, 1, 1], [], []>} : vector<8x32xf32>, vector<32x32xf32>, vector<8x32xf32> -> vector<8x32xf32>
    %189 = vector.broadcast %29 : vector<1x32xf32> to vector<8x32xf32>
    %190 = arith.addf %188, %189 : vector<8x32xf32>
    %191 = vector.extract_strided_slice %8 {offsets = [40, 0], sizes = [8, 32], strides = [1, 1]} : vector<64x32xf32> to vector<8x32xf32>
    %192 = arith.addf %191, %186 : vector<8x32xf32>
    %193 = arith.negf %192 : vector<8x32xf32>
    %194 = math.exp %193 : vector<8x32xf32>
    %cst_78 = arith.constant 1.000000e+00 : f32
    %195 = vector.broadcast %cst_78 : f32 to vector<8x32xf32>
    %196 = arith.addf %195, %194 : vector<8x32xf32>
    %197 = arith.divf %195, %196 : vector<8x32xf32>
    %198 = vector.extract_strided_slice %15 {offsets = [40, 0], sizes = [8, 32], strides = [1, 1]} : vector<64x32xf32> to vector<8x32xf32>
    %199 = arith.addf %198, %187 : vector<8x32xf32>
    %200 = arith.negf %199 : vector<8x32xf32>
    %201 = math.exp %200 : vector<8x32xf32>
    %cst_79 = arith.constant 1.000000e+00 : f32
    %202 = vector.broadcast %cst_79 : f32 to vector<8x32xf32>
    %203 = arith.addf %202, %201 : vector<8x32xf32>
    %204 = arith.divf %202, %203 : vector<8x32xf32>
    %205 = vector.extract_strided_slice %22 {offsets = [40, 0], sizes = [8, 32], strides = [1, 1]} : vector<64x32xf32> to vector<8x32xf32>
    %206 = arith.mulf %197, %190 : vector<8x32xf32>
    %207 = arith.addf %205, %206 : vector<8x32xf32>
    %208 = math.tanh %207 : vector<8x32xf32>
    %cst_80 = arith.constant 1.000000e+00 : f32
    %209 = vector.broadcast %cst_80 : f32 to vector<8x32xf32>
    %210 = arith.subf %209, %204 : vector<8x32xf32>
    %211 = arith.mulf %210, %208 : vector<8x32xf32>
    %212 = arith.mulf %204, %182 : vector<8x32xf32>
    %213 = arith.addf %211, %212 : vector<8x32xf32>
    %c5 = arith.constant 5 : index
    %c0_81 = arith.constant 0 : index
    %c0_82 = arith.constant 0 : index
    %214 = vector.load %arg8[%c5, %c0_81, %c0_82] : memref<8x8x32xf32, #tpu.memory_space<vmem>>, vector<1x8x32xf32>
    %215 = vector.shape_cast %214 : vector<1x8x32xf32> to vector<8x32xf32>
    %216 = vector.shape_cast %213 : vector<8x32xf32> to vector<1x8x32xf32>
    tpu.vector_store %arg8[%c5, %c0_81, %c0_82], %216 {strides = array<i32>} : memref<8x8x32xf32, #tpu.memory_space<vmem>>, vector<1x8x32xf32>,
    %cst_83 = arith.constant dense<0.000000e+00> : vector<8x32xf32>
    %217 = tpu.matmul %213, %24, %cst_83 {dimension_numbers = #tpu.dot_dimension_numbers<[1], [0], [0], [1], [0, 0, 1, 1], [], []>} : vector<8x32xf32>, vector<32x32xf32>, vector<8x32xf32> -> vector<8x32xf32>
    %cst_84 = arith.constant dense<0.000000e+00> : vector<8x32xf32>
    %218 = tpu.matmul %213, %26, %cst_84 {dimension_numbers = #tpu.dot_dimension_numbers<[1], [0], [0], [1], [0, 0, 1, 1], [], []>} : vector<8x32xf32>, vector<32x32xf32>, vector<8x32xf32> -> vector<8x32xf32>
    %cst_85 = arith.constant dense<0.000000e+00> : vector<8x32xf32>
    %219 = tpu.matmul %213, %28, %cst_85 {dimension_numbers = #tpu.dot_dimension_numbers<[1], [0], [0], [1], [0, 0, 1, 1], [], []>} : vector<8x32xf32>, vector<32x32xf32>, vector<8x32xf32> -> vector<8x32xf32>
    %220 = vector.broadcast %29 : vector<1x32xf32> to vector<8x32xf32>
    %221 = arith.addf %219, %220 : vector<8x32xf32>
    %222 = vector.extract_strided_slice %8 {offsets = [48, 0], sizes = [8, 32], strides = [1, 1]} : vector<64x32xf32> to vector<8x32xf32>
    %223 = arith.addf %222, %217 : vector<8x32xf32>
    %224 = arith.negf %223 : vector<8x32xf32>
    %225 = math.exp %224 : vector<8x32xf32>
    %cst_86 = arith.constant 1.000000e+00 : f32
    %226 = vector.broadcast %cst_86 : f32 to vector<8x32xf32>
    %227 = arith.addf %226, %225 : vector<8x32xf32>
    %228 = arith.divf %226, %227 : vector<8x32xf32>
    %229 = vector.extract_strided_slice %15 {offsets = [48, 0], sizes = [8, 32], strides = [1, 1]} : vector<64x32xf32> to vector<8x32xf32>
    %230 = arith.addf %229, %218 : vector<8x32xf32>
    %231 = arith.negf %230 : vector<8x32xf32>
    %232 = math.exp %231 : vector<8x32xf32>
    %cst_87 = arith.constant 1.000000e+00 : f32
    %233 = vector.broadcast %cst_87 : f32 to vector<8x32xf32>
    %234 = arith.addf %233, %232 : vector<8x32xf32>
    %235 = arith.divf %233, %234 : vector<8x32xf32>
    %236 = vector.extract_strided_slice %22 {offsets = [48, 0], sizes = [8, 32], strides = [1, 1]} : vector<64x32xf32> to vector<8x32xf32>
    %237 = arith.mulf %228, %221 : vector<8x32xf32>
    %238 = arith.addf %236, %237 : vector<8x32xf32>
    %239 = math.tanh %238 : vector<8x32xf32>
    %cst_88 = arith.constant 1.000000e+00 : f32
    %240 = vector.broadcast %cst_88 : f32 to vector<8x32xf32>
    %241 = arith.subf %240, %235 : vector<8x32xf32>
    %242 = arith.mulf %241, %239 : vector<8x32xf32>
    %243 = arith.mulf %235, %213 : vector<8x32xf32>
    %244 = arith.addf %242, %243 : vector<8x32xf32>
    %c6 = arith.constant 6 : index
    %c0_89 = arith.constant 0 : index
    %c0_90 = arith.constant 0 : index
    %245 = vector.load %arg8[%c6, %c0_89, %c0_90] : memref<8x8x32xf32, #tpu.memory_space<vmem>>, vector<1x8x32xf32>
    %246 = vector.shape_cast %245 : vector<1x8x32xf32> to vector<8x32xf32>
    %247 = vector.shape_cast %244 : vector<8x32xf32> to vector<1x8x32xf32>
    tpu.vector_store %arg8[%c6, %c0_89, %c0_90], %247 {strides = array<i32>} : memref<8x8x32xf32, #tpu.memory_space<vmem>>, vector<1x8x32xf32>,
    %cst_91 = arith.constant dense<0.000000e+00> : vector<8x32xf32>
    %248 = tpu.matmul %244, %24, %cst_91 {dimension_numbers = #tpu.dot_dimension_numbers<[1], [0], [0], [1], [0, 0, 1, 1], [], []>} : vector<8x32xf32>, vector<32x32xf32>, vector<8x32xf32> -> vector<8x32xf32>
    %cst_92 = arith.constant dense<0.000000e+00> : vector<8x32xf32>
    %249 = tpu.matmul %244, %26, %cst_92 {dimension_numbers = #tpu.dot_dimension_numbers<[1], [0], [0], [1], [0, 0, 1, 1], [], []>} : vector<8x32xf32>, vector<32x32xf32>, vector<8x32xf32> -> vector<8x32xf32>
    %cst_93 = arith.constant dense<0.000000e+00> : vector<8x32xf32>
    %250 = tpu.matmul %244, %28, %cst_93 {dimension_numbers = #tpu.dot_dimension_numbers<[1], [0], [0], [1], [0, 0, 1, 1], [], []>} : vector<8x32xf32>, vector<32x32xf32>, vector<8x32xf32> -> vector<8x32xf32>
    %251 = vector.broadcast %29 : vector<1x32xf32> to vector<8x32xf32>
    %252 = arith.addf %250, %251 : vector<8x32xf32>
    %253 = vector.extract_strided_slice %8 {offsets = [56, 0], sizes = [8, 32], strides = [1, 1]} : vector<64x32xf32> to vector<8x32xf32>
    %254 = arith.addf %253, %248 : vector<8x32xf32>
    %255 = arith.negf %254 : vector<8x32xf32>
    %256 = math.exp %255 : vector<8x32xf32>
    %cst_94 = arith.constant 1.000000e+00 : f32
    %257 = vector.broadcast %cst_94 : f32 to vector<8x32xf32>
    %258 = arith.addf %257, %256 : vector<8x32xf32>
    %259 = arith.divf %257, %258 : vector<8x32xf32>
    %260 = vector.extract_strided_slice %15 {offsets = [56, 0], sizes = [8, 32], strides = [1, 1]} : vector<64x32xf32> to vector<8x32xf32>
    %261 = arith.addf %260, %249 : vector<8x32xf32>
    %262 = arith.negf %261 : vector<8x32xf32>
    %263 = math.exp %262 : vector<8x32xf32>
    %cst_95 = arith.constant 1.000000e+00 : f32
    %264 = vector.broadcast %cst_95 : f32 to vector<8x32xf32>
    %265 = arith.addf %264, %263 : vector<8x32xf32>
    %266 = arith.divf %264, %265 : vector<8x32xf32>
    %267 = vector.extract_strided_slice %22 {offsets = [56, 0], sizes = [8, 32], strides = [1, 1]} : vector<64x32xf32> to vector<8x32xf32>
    %268 = arith.mulf %259, %252 : vector<8x32xf32>
    %269 = arith.addf %267, %268 : vector<8x32xf32>
    %270 = math.tanh %269 : vector<8x32xf32>
    %cst_96 = arith.constant 1.000000e+00 : f32
    %271 = vector.broadcast %cst_96 : f32 to vector<8x32xf32>
    %272 = arith.subf %271, %266 : vector<8x32xf32>
    %273 = arith.mulf %272, %270 : vector<8x32xf32>
    %274 = arith.mulf %266, %244 : vector<8x32xf32>
    %275 = arith.addf %273, %274 : vector<8x32xf32>
    %c7 = arith.constant 7 : index
    %c0_97 = arith.constant 0 : index
    %c0_98 = arith.constant 0 : index
    %276 = vector.load %arg8[%c7, %c0_97, %c0_98] : memref<8x8x32xf32, #tpu.memory_space<vmem>>, vector<1x8x32xf32>
    %277 = vector.shape_cast %276 : vector<1x8x32xf32> to vector<8x32xf32>
    %278 = vector.shape_cast %275 : vector<8x32xf32> to vector<1x8x32xf32>
    tpu.vector_store %arg8[%c7, %c0_97, %c0_98], %278 {strides = array<i32>} : memref<8x8x32xf32, #tpu.memory_space<vmem>>, vector<1x8x32xf32>,
    %c0_99 = arith.constant 0 : index
    %c0_100 = arith.constant 0 : index
    %279 = vector.load %arg6[%c0_99, %c0_100] : memref<32x32xf32, #tpu.memory_space<vmem>>, vector<32x32xf32>
    %cst_101 = arith.constant dense<0.000000e+00> : vector<8x32xf32>
    %280 = tpu.matmul %275, %279, %cst_101 {dimension_numbers = #tpu.dot_dimension_numbers<[1], [0], [0], [1], [0, 0, 1, 1], [], []>} : vector<8x32xf32>, vector<32x32xf32>, vector<8x32xf32> -> vector<8x32xf32>
    %c0_102 = arith.constant 0 : index
    %c0_103 = arith.constant 0 : index
    %281 = vector.load %arg7[%c0_102, %c0_103] : memref<1x32xf32, #tpu.memory_space<vmem>>, vector<1x32xf32>
    %282 = vector.broadcast %281 : vector<1x32xf32> to vector<8x32xf32>
    %283 = arith.addf %280, %282 : vector<8x32xf32>
    %284 = math.tanh %283 : vector<8x32xf32>
    %c0_104 = arith.constant 0 : index
    %c0_105 = arith.constant 0 : index
    %285 = vector.load %arg9[%c0_104, %c0_105] : memref<8x32xf32, #tpu.memory_space<vmem>>, vector<8x32xf32>
    tpu.vector_store %arg9[%c0_104, %c0_105], %284 {strides = array<i32>} : memref<8x32xf32, #tpu.memory_space<vmem>>, vector<8x32xf32>,
    return
  }
  func.func @transform_0(%arg0: i32) -> (i32, i32, i32) {
    %c0_i32 = arith.constant 0 : i32
    %c0_i32_0 = arith.constant 0 : i32
    %c0_i32_1 = arith.constant 0 : i32
    %c0_i32_2 = arith.constant 0 : i32
    return %c0_i32, %c0_i32_0, %c0_i32_1 : i32, i32, i32
  }
  func.func @transform_1(%arg0: i32) -> (i32, i32, i32) {
    %c0_i32 = arith.constant 0 : i32
    %c0_i32_0 = arith.constant 0 : i32
    %c0_i32_1 = arith.constant 0 : i32
    %c0_i32_2 = arith.constant 0 : i32
    return %c0_i32, %c0_i32_0, %c0_i32_1 : i32, i32, i32
  }
  func.func @transform_2(%arg0: i32) -> (i32, i32, i32) {
    %c0_i32 = arith.constant 0 : i32
    %c0_i32_0 = arith.constant 0 : i32
    %c0_i32_1 = arith.constant 0 : i32
    %c0_i32_2 = arith.constant 0 : i32
    return %c0_i32, %c0_i32_0, %c0_i32_1 : i32, i32, i32
  }
  func.func @transform_3(%arg0: i32) -> (i32, i32, i32) {
    %c0_i32 = arith.constant 0 : i32
    %c0_i32_0 = arith.constant 0 : i32
    %c0_i32_1 = arith.constant 0 : i32
    %c0_i32_2 = arith.constant 0 : i32
    return %c0_i32, %c0_i32_0, %c0_i32_1 : i32, i32, i32
  }
  func.func @transform_4(%arg0: i32) -> (i32, i32) {
    %c0_i32 = arith.constant 0 : i32
    %c0_i32_0 = arith.constant 0 : i32
    %c0_i32_1 = arith.constant 0 : i32
    return %c0_i32, %c0_i32_0 : i32, i32
  }
  func.func @transform_5(%arg0: i32) -> (i32, i32) {
    %c0_i32 = arith.constant 0 : i32
    %c0_i32_0 = arith.constant 0 : i32
    %c0_i32_1 = arith.constant 0 : i32
    return %c0_i32, %c0_i32_0 : i32, i32
  }
  func.func @transform_6(%arg0: i32) -> (i32, i32) {
    %c0_i32 = arith.constant 0 : i32
    %c0_i32_0 = arith.constant 0 : i32
    %c0_i32_1 = arith.constant 0 : i32
    return %c0_i32, %c0_i32_0 : i32, i32
  }
  func.func @transform_7(%arg0: i32) -> (i32, i32, i32) {
    %c0_i32 = arith.constant 0 : i32
    %c0_i32_0 = arith.constant 0 : i32
    %c0_i32_1 = arith.constant 0 : i32
    %c0_i32_2 = arith.constant 0 : i32
    return %c0_i32, %c0_i32_0, %c0_i32_1 : i32, i32, i32
  }
  func.func @transform_8(%arg0: i32) -> (i32, i32) {
    %c0_i32 = arith.constant 0 : i32
    %c0_i32_0 = arith.constant 0 : i32
    %c0_i32_1 = arith.constant 0 : i32
    return %c0_i32, %c0_i32_0 : i32, i32
  }
}

</mosaic_0001>

<bundles_post_ra>
// kernel: encoder_forward.1
= control target key start
LH: loop header
LB: loop body
LE: loop exit
PB: predicated region body
PF: predicated region fallthrough
CT: control target
= control target key end

     0   :  { %14 = vsyncpa [#allocation3], 0  ;;  %vm44_vm0 = vcmask 130048   ;;  %v1413_v12 = vmov 0.0   ;;  %s1871_s0 = inlined_call_operand.vmem [shape: f32[8,8,16], index: 0, kind: input, shape index: {}]   ;;  %s1872_s1 = inlined_call_operand.vmem [shape: f32[3,16,32], index: 1, kind: input, shape index: {}]   ;;  %s1873_s2 = inlined_call_operand.vmem [shape: f32[3,32,32], index: 2, kind: input, shape index: {}]   ;;  %s1874_s3 = inlined_call_operand.vmem [shape: f32[3,1,32], index: 3, kind: input, shape index: {}]   ;;  %s1875_s4 = inlined_call_operand.vmem [shape: f32[1,32], index: 4, kind: input, shape index: {}]   ;;  %s1876_s5 = inlined_call_operand.vmem [shape: f32[32,32], index: 5, kind: input, shape index: {}]   ;;  %s1877_s6 = inlined_call_operand.vmem [shape: f32[1,32], index: 6, kind: input, shape index: {}]   ;;  %s1878_s7 = inlined_call_operand.hbm [shape: f32[8,8,32], index: 7, kind: output, shape index: {0}]   ;;  %s1879_s8 = inlined_call_operand.hbm [shape: f32[8,32], index: 8, kind: output, shape index: {1}]  }
   0x1   :  { %v1466_v0 = vld [vmem:[%s1873_s2 + $0x18] sm:$0xff]  ;;  %v1471_v1 = vld [vmem:[%s1873_s2 + $0x10] sm:$0xff]  ;;  %v39_v2 = vld [vmem:[%s1872_s1 + $0x8] sm:$0xff] }
   0x2   :  { %239 = vmatpush.msra.mxu3 %v1466_v0  ;;  %v1480_v3 = vld [vmem:[%s1873_s2 + $0x8] sm:$0xff]  ;;  %83 = vmatpush.msra.mxu0 %v39_v2  ;;  %v38_v4 = vld [vmem:[%s1872_s1] sm:$0xff]  ;;  %v1198_v6 = vld [vmem:[%s1872_s1 + $0x18] sm:$0xff] }
   0x3   :  { %v30_v5 = vld [vmem:[%s1871_s0] sm:$0xff]  ;;  %132 = vmatpush.msra.mxu1 %v1198_v6  ;;  %v1197_v8 = vld [vmem:[%s1872_s1 + $0x10] sm:$0xff]  ;;  %v1209_v9 = vld [vmem:[%s1872_s1 + $0x28] sm:$0xff] }
   0x4   :  { %240 = vmatpush.msra.mxu3 %v1471_v1  ;;  %v1495_v7 = vld [vmem:[%s1873_s2] sm:$0xff]  ;;  %84 = vmatpush.msra.mxu0 %v38_v4  ;;  %v1508_v10 = vld [vmem:[%s1873_s2 + $0x38] sm:$0xff]  ;;  %v1518_v13 = vld [vmem:[%s1873_s2 + $0x30] sm:$0xff] }
   0x5   :  { %1189 = vmatmul.msk.f32.vlgmr.msra.gmra.mxu0 %vm44_vm0, %v30_v5  ;;  %133 = vmatpush.msra.mxu1 %v1197_v8  ;;  %v1208_v11 = vld [vmem:[%s1872_s1 + $0x20] sm:$0xff] }
   0x6   :  { %241 = vmatpush.msra.mxu3 %v1480_v3  ;;  %181 = vmatpush.msra.mxu2 %v1209_v9 }
   0x7   :  { %1200 = vmatmul.msk.f32.vlgmr.msra.gmra.mxu1 %vm44_vm0, %v30_v5 }
   0x8   :  { %242 = vmatpush.msra.mxu3 %v1495_v7  ;;  %182 = vmatpush.msra.mxu2 %v1208_v11 }
   0x9   :  { %243 = vmatmul.f32.vlgmr.msra.gmra.mxu3 %v1413_v12 }
   0xa   :  { %15 = vsyncpa [#allocation5], 0  ;;  %259 = vmatpush.msrb.mxu3 %v1508_v10  ;;  %v1524_v14 = vld [vmem:[%s1873_s2 + $0x58] sm:$0xff]  ;;  %1211 = vmatmul.msk.f32.vlgmr.msra.gmra.mxu2 %vm44_vm0, %v30_v5  ;;  %v1530_v15 = vld [vmem:[%s1873_s2 + $0x28] sm:$0xff]  ;;  %vm223_vm9 = vcmask 261120   ;;  %s1161_s1 = sshll.u32 %s1878_s7, 4  ;;  %s1162_s1 = int_to_ptr.hbm [resolvable:$true] %s1161_s1 }
   0xb   :  { %505 = vmatpush.msrb.mxu0 %v1524_v14  ;;  %577 = vmatpush.msrb.mxu1 %v1466_v0  ;;  %v1538_v16 = vld [vmem:[%s1873_s2 + $0x50] sm:$0xff]  ;;  %v1544_v17 = vld [vmem:[%s1873_s2 + $0x20] sm:$0xff]  ;;  %v1552_v18 = vld [vmem:[%s1873_s2 + $0x48] sm:$0xff]  ;;  %s1415_s11 = smov 128   ;;  %s1416_s12 = smov 8  }
   0xc   :  { %260 = vmatpush.msrb.mxu3 %v1518_v13  ;;  %597 = vmatpush.msrb.mxu2 %v1508_v10  ;;  %v1561_v19 = vld [vmem:[%s1873_s2 + $0x40] sm:$0xff]  ;;  %v31_v34 = vld [vmem:[%s1871_s0 + $0x8] sm:$0xff]  ;;  %v32_v11 = vld [vmem:[%s1871_s0 + $0x10] sm:$0xff]  ;;  %s1417_s15 = smov [#allocation4]   ;;  %s1175_s18 = sshll.u32 %s1879_s8, 4  ;;  %s1176_s18 = int_to_ptr.hbm [resolvable:$true] %s1175_s18 }
   0xd   :  { %506 = vmatpush.msrb.mxu0 %v1538_v16  ;;  %578 = vmatpush.msrb.mxu1 %v1471_v1  ;;  %v1594_v20 = vld [vmem:[%s1874_s3] ss:$0 sm:$0xff]  ;;  %v1600_v25 = vld [vmem:[%s1874_s3 + $0x1] ss:$0 sm:$0xff]  ;;  %v1617_v45 = vld [vmem:[%s1874_s3 + $0x2] ss:$0 sm:$0xff] }
   0xe   :  { %261 = vmatpush.msrb.mxu3 %v1530_v15  ;;  %598 = vmatpush.msrb.mxu2 %v1518_v13  ;;  %v1612_v39 = vld [vmem:[%s1875_s4] ss:$0 sm:$0xff]  ;;  %s1173_s16 = sshll.u32 %s1417_s15, 4  ;;  %s1174_s16 = int_to_ptr.vmem [resolvable:$true] %s1173_s16 }
   0xf   :  { %507 = vmatpush.msrb.mxu0 %v1552_v18  ;;  %579 = vmatpush.msrb.mxu1 %v1480_v3 }
  0x10   :  { %262 = vmatpush.msrb.mxu3 %v1544_v17  ;;  %599 = vmatpush.msrb.mxu2 %v1530_v15 }
  0x11   :  { %263 = vmatmul.f32.vlgmr.msrb.gmra.mxu3 %v1413_v12  ;;  %508 = vmatpush.msrb.mxu0 %v1561_v19 }
  0x12   :  { %282 = vmatpush.msra.mxu3 %v1524_v14  ;;  %580 = vmatpush.msrb.mxu1 %v1495_v7 }
  0x13   :  { %600 = vmatpush.msrb.mxu2 %v1544_v17  ;;  %689 = vmatpush.msra.mxu0 %v1466_v0 }
  0x14   :  { %283 = vmatpush.msra.mxu3 %v1538_v16  ;;  %709 = vmatpush.msra.mxu1 %v1508_v10 }
  0x15   :  { %729 = vmatpush.msra.mxu2 %v1524_v14  ;;  %690 = vmatpush.msra.mxu0 %v1471_v1 }
  0x16   :  { %284 = vmatpush.msra.mxu3 %v1552_v18  ;;  %710 = vmatpush.msra.mxu1 %v1518_v13 }
  0x17   :  { %730 = vmatpush.msra.mxu2 %v1538_v16  ;;  %691 = vmatpush.msra.mxu0 %v1480_v3 }
  0x18   :  { %285 = vmatpush.msra.mxu3 %v1561_v19  ;;  %711 = vmatpush.msra.mxu1 %v1530_v15 }
  0x19   :  { %286 = vmatmul.f32.vlgmr.msra.gmra.mxu3 %v1413_v12  ;;  %731 = vmatpush.msra.mxu2 %v1552_v18  ;;  %v33_v12 = vld [vmem:[%s1871_s0 + $0x18] sm:$0xff] }
  0x1a   :  { %353 = vmatpush.msrb.mxu3 %v1466_v0  ;;  %692 = vmatpush.msra.mxu0 %v1495_v7 }
  0x1b   :  { %712 = vmatpush.msra.mxu1 %v1544_v17  ;;  %732 = vmatpush.msra.mxu2 %v1561_v19 }
  0x1c   :  { %354 = vmatpush.msrb.mxu3 %v1471_v1  ;;  %1190 = vmatmul.msk.f32.gmra.mxu0 %vm44_vm0, %v31_v34 }
  0x1d   :  { %1201 = vmatmul.msk.f32.gmra.mxu1 %vm44_vm0, %v31_v34  ;;  %1212 = vmatmul.msk.f32.gmra.mxu2 %vm44_vm0, %v31_v34 }
  0x1e   :  { %355 = vmatpush.msrb.mxu3 %v1480_v3 }
  0x20   :  { %356 = vmatpush.msrb.mxu3 %v1495_v7 }
  0x22   :  { %373 = vmatpush.msra.mxu3 %v1508_v10 }
  0x24   :  { %374 = vmatpush.msra.mxu3 %v1518_v13  ;;  %1191 = vmatmul.msk.f32.gmra.mxu0 %vm44_vm0, %v32_v11 }
  0x25   :  { %1202 = vmatmul.msk.f32.gmra.mxu1 %vm44_vm0, %v32_v11  ;;  %1213 = vmatmul.msk.f32.gmra.mxu2 %vm44_vm0, %v32_v11 }
  0x26   :  { %375 = vmatpush.msra.mxu3 %v1530_v15 }
  0x28   :  { %376 = vmatpush.msra.mxu3 %v1544_v17 }
  0x2c   :  { %1192 = vmatmul.msk.f32.gmra.mxu0 %vm44_vm0, %v33_v12 }
  0x2d   :  { %1203 = vmatmul.msk.f32.gmra.mxu1 %vm44_vm0, %v33_v12  ;;  %1214 = vmatmul.msk.f32.gmra.mxu2 %vm44_vm0, %v33_v12 }
  0x82   :  { %v86_v21 = vpop.f32.mrf.mxu0 }
  0x83   :  { %v87_v22 = vadd.f32 %v1594_v20, %v86_v21  ;;  %v34_v21 = vld [vmem:[%s1871_s0 + $0x20] sm:$0xff] }
  0x84   :  { %v135_v26 = vpop.f32.mrf.mxu1  ;;  %1193 = vmatmul.msk.f32.gmra.mxu0 %vm44_vm0, %v34_v21  ;;  %1204 = vmatmul.msk.f32.gmra.mxu1 %vm44_vm0, %v34_v21 }
  0x85   :  { %v136_v28 = vadd.f32 %v1600_v25, %v135_v26  ;;  %1215 = vmatmul.msk.f32.gmra.mxu2 %vm44_vm0, %v34_v21  ;;  %v36_v26 = vld [vmem:[%s1871_s0 + $0x30] sm:$0xff] }
  0x8c   :  { %v244_v23 = vpop.f32.mrf.mxu3 }
  0x8d   :  { %v290_v24 = vadd.f32 %v244_v23, %v87_v22  ;;  %v184_v46 = vpop.f32.mrf.mxu2  ;;  %v35_v22 = vld [vmem:[%s1871_s0 + $0x28] sm:$0xff] }
  0x8e   :  { %v185_v53 = vadd.f32 %v1617_v45, %v184_v46  ;;  %1194 = vmatmul.msk.f32.gmra.mxu0 %vm44_vm0, %v35_v22  ;;  %1205 = vmatmul.msk.f32.gmra.mxu1 %vm44_vm0, %v35_v22 }
  0x8f   :  { %v1227_v27 = vmul.f32 -1.442695, %v290_v24  ;;  %1216 = vmatmul.msk.f32.gmra.mxu2 %vm44_vm0, %v35_v22 }
  0x91   :  { %1275 = vpow2.f32 %v1227_v27 }
  0x94   :  { %v264_v29 = vpop.f32.mrf.mxu3 }
  0x95   :  { %v310_v30 = vadd.f32 %v264_v29, %v136_v28 }
  0x96   :  { %1195 = vmatmul.msk.f32.gmra.mxu0 %vm44_vm0, %v36_v26  ;;  %1206 = vmatmul.msk.f32.gmra.mxu1 %vm44_vm0, %v36_v26 }
  0x97   :  { %v1276_v31 = vpop.eup %1275  ;;  %v1228_v32 = vmul.f32 -1.442695, %v310_v30  ;;  %1217 = vmatmul.msk.f32.gmra.mxu2 %vm44_vm0, %v36_v26 }
  0x98   :  { %v294_v33 = vadd.f32 1.0, %v1276_v31 }
  0x99   :  { %1277 = vpow2.f32 %v1228_v32  ;;  %v89_v23 = vpop.f32.mrf.mxu0  ;;  %v37_v32 = vld [vmem:[%s1871_s0 + $0x38] sm:$0xff] }
  0x9a   :  { %1279 = vrcp.f32 %v294_v33  ;;  %v306_v42 = vand.u32 2147483648, %v294_v33  ;;  %v304_v44 = vand.u32 2147483647, %v294_v33  ;;  %vm300_vm2 = vweird.f32 %v294_v33  ;;  %v138_v29 = vpop.f32.mrf.mxu1 }
  0x9b   :  { %v90_v24 = vadd.f32 %v1594_v20, %v89_v23  ;;  %v139_v31 = vadd.f32 %v1600_v25, %v138_v29 }
  0x9c   :  { %v287_v41 = vpop.f32.mrf.mxu3  ;;  %v307_v50 = vor.u32 1.1754944e-38, %v306_v42  ;;  %vm305_vm4 = vcmp.eq.f32.partialorder %v304_v44, 8.507059e+37 }
  0x9d   :  { %v288_v47 = vadd.f32 %v1612_v39, %v287_v41 }
  0x9e   :  { %1196 = vmatmul.msk.f32.gmra.mxu0 %vm44_vm0, %v37_v32  ;;  %1207 = vmatmul.msk.f32.gmra.mxu1 %vm44_vm0, %v37_v32 }
  0x9f   :  { %v1278_v35 = vpop.eup %1277  ;;  %1218 = vmatmul.msk.f32.gmra.mxu2 %vm44_vm0, %v37_v32 }
  0xa0   :  { %v1280_v36 = vpop.eup %1279  ;;  %v314_v37 = vadd.f32 1.0, %v1278_v35 }
  0xa1   :  { %v296_v38 = vmul.f32 %v1280_v36, %v294_v33  ;;  %vm301_vm1 = vweird.f32 %v1280_v36 }
  0xa2   :  { %1281 = vrcp.f32 %v314_v37  ;;  %vm302_vm3 = vmor %vm300_vm2, %vm301_vm1  ;;  %v326_v57 = vand.u32 2147483648, %v314_v37  ;;  %v324_v59 = vand.u32 2147483647, %v314_v37  ;;  %vm320_vm6 = vweird.f32 %v314_v37 }
  0xa3   :  { %v297_v40 = vsub.f32 1.0, %v296_v38 }
  0xa4   :  { %v327_v62 = vor.u32 1.1754944e-38, %v326_v57  ;;  %vm325_vm8 = vcmp.eq.f32.partialorder %v324_v59, 8.507059e+37 }
  0xa5   :  { %v298_v43 = vmul.f32 %v1280_v36, %v297_v40 }
  0xa7   :  { %v299_v48 = vadd.f32 %v1280_v36, %v298_v43 }
  0xa8   :  { %v1282_v49 = vpop.eup %1281 }
  0xa9   :  { %v316_v51 = vmul.f32 %v1282_v49, %v314_v37  ;;  %v303_v52 = vsel %vm302_vm3, %v1280_v36, %v299_v48  ;;  %vm321_vm5 = vweird.f32 %v1282_v49  ;;  %v187_v48 = vpop.f32.mrf.mxu2 }
  0xaa   :  { %v308_v54 = vsel %vm305_vm4, %v307_v50, %v303_v52  ;;  %vm322_vm7 = vmor %vm320_vm6, %vm321_vm5 }
  0xab   :  { %v317_v55 = vsub.f32 1.0, %v316_v51  ;;  %v330_v56 = vmul.f32 %v308_v54, %v288_v47 }
  0xad   :  { %v318_v58 = vmul.f32 %v1282_v49, %v317_v55  ;;  %v331_v60 = vadd.f32 %v330_v56, %v185_v53  ;;  %v188_v53 = vadd.f32 %v1617_v45, %v187_v48 }
  0xaf   :  { %v319_v61 = vadd.f32 %v1282_v49, %v318_v58  ;;  %1283 = vtanh.f32 %v331_v60 }
  0xb1   :  { %v323_v63 = vsel %vm322_vm7, %v1282_v49, %v319_v61 }
  0xb2   :  { %v328_v2 = vsel %vm325_vm8, %v327_v62, %v323_v63 }
  0xb3   :  { %v333_v4 = vsub.f32 1.0, %v328_v2  ;;  %v335_v8 = vmul.f32 0.0, %v328_v2 }
  0xb5   :  { %v1284_v5 = vpop.eup %1283 }
  0xb6   :  { %v334_v6 = vmul.f32 %v1284_v5, %v333_v4 }
  0xb8   :  { %v1621_v9 = vadd.f32 %v335_v8, %v334_v6 }
  0xba   :  { %337 = vst.msk [vmem:[#allocation2] sm:$0xff] %vm223_vm9, %v1621_v9  ;;  %1229 = vmatmul.msk.f32.vlgmr.msrb.gmra.mxu3 %vm223_vm9, %v1621_v9 }
  0xbb   :  { %393 = vmatpush.msrb.mxu3 %v1524_v14 }
  0xbd   :  { %394 = vmatpush.msrb.mxu3 %v1538_v16 }
  0xbf   :  { %395 = vmatpush.msrb.mxu3 %v1552_v18 }
  0xc1   :  { %396 = vmatpush.msrb.mxu3 %v1561_v19 }
  0xc2   :  { %1230 = vmatmul.msk.f32.vlgmr.msra.gmra.mxu3 %vm223_vm9, %v1621_v9 }
  0xc3   :  { %465 = vmatpush.msra.mxu3 %v1466_v0 }
  0xc5   :  { %466 = vmatpush.msra.mxu3 %v1471_v1 }
  0xc7   :  { %467 = vmatpush.msra.mxu3 %v1480_v3 }
  0xc9   :  { %468 = vmatpush.msra.mxu3 %v1495_v7 }
  0xca   :  { %1231 = vmatmul.msk.f32.vlgmr.msrb.gmra.mxu3 %vm223_vm9, %v1621_v9 }
  0xcb   :  { %485 = vmatpush.msrb.mxu3 %v1508_v10 }
  0xcd   :  { %486 = vmatpush.msrb.mxu3 %v1518_v13 }
  0xcf   :  { %487 = vmatpush.msrb.mxu3 %v1530_v15 }
  0xd1   :  { %488 = vmatpush.msrb.mxu3 %v1544_v17 }
 0x13d   :  { %v358_v27 = vpop.f32.mrf.mxu3 }
 0x13e   :  { %v401_v28 = vadd.f32 %v358_v27, %v90_v24 }
 0x140   :  { %v1232_v30 = vmul.f32 -1.442695, %v401_v28 }
 0x142   :  { %1285 = vpow2.f32 %v1232_v30  ;;  %v141_v30 = vpop.f32.mrf.mxu1 }
 0x145   :  { %v378_v33 = vpop.f32.mrf.mxu3 }
 0x146   :  { %v421_v34 = vadd.f32 %v378_v33, %v139_v31  ;;  %v142_v33 = vadd.f32 %v1600_v25, %v141_v30 }
 0x148   :  { %v1286_v35 = vpop.eup %1285  ;;  %v1233_v36 = vmul.f32 -1.442695, %v421_v34 }
 0x149   :  { %v405_v37 = vadd.f32 1.0, %v1286_v35 }
 0x14a   :  { %1287 = vpow2.f32 %v1233_v36 }
 0x14b   :  { %1289 = vrcp.f32 %v405_v37  ;;  %v417_v44 = vand.u32 2147483648, %v405_v37  ;;  %v415_v47 = vand.u32 2147483647, %v405_v37  ;;  %vm411_vm11 = vweird.f32 %v405_v37 }
 0x14d   :  { %v398_v49 = vpop.f32.mrf.mxu3  ;;  %v418_v52 = vor.u32 1.1754944e-38, %v417_v44  ;;  %vm416_vm13 = vcmp.eq.f32.partialorder %v415_v47, 8.507059e+37 }
 0x14e   :  { %v399_v55 = vadd.f32 %v1612_v39, %v398_v49 }
 0x150   :  { %v1288_v38 = vpop.eup %1287 }
 0x151   :  { %v1290_v40 = vpop.eup %1289  ;;  %v425_v41 = vadd.f32 1.0, %v1288_v38 }
 0x152   :  { %v407_v42 = vmul.f32 %v1290_v40, %v405_v37  ;;  %vm412_vm10 = vweird.f32 %v1290_v40 }
 0x153   :  { %1291 = vrcp.f32 %v425_v41  ;;  %vm413_vm12 = vmor %vm411_vm11, %vm412_vm10  ;;  %v437_v60 = vand.u32 2147483648, %v425_v41  ;;  %v435_v62 = vand.u32 2147483647, %v425_v41  ;;  %vm431_vm15 = vweird.f32 %v425_v41 }
 0x154   :  { %v408_v43 = vsub.f32 1.0, %v407_v42 }
 0x155   :  { %v438_v4 = vor.u32 1.1754944e-38, %v437_v60  ;;  %vm436_vm1 = vcmp.eq.f32.partialorder %v435_v62, 8.507059e+37 }
 0x156   :  { %v409_v46 = vmul.f32 %v1290_v40, %v408_v43 }
 0x158   :  { %v410_v50 = vadd.f32 %v1290_v40, %v409_v46 }
 0x159   :  { %v1292_v51 = vpop.eup %1291 }
 0x15a   :  { %v427_v54 = vmul.f32 %v1292_v51, %v425_v41  ;;  %v414_v56 = vsel %vm413_vm12, %v1290_v40, %v410_v50  ;;  %vm432_vm14 = vweird.f32 %v1292_v51 }
 0x15b   :  { %v419_v57 = vsel %vm416_vm13, %v418_v52, %v414_v56  ;;  %vm433_vm0 = vmor %vm431_vm15, %vm432_vm14 }
 0x15c   :  { %v428_v58 = vsub.f32 1.0, %v427_v54  ;;  %v441_v59 = vmul.f32 %v419_v57, %v399_v55 }
 0x15e   :  { %v429_v61 = vmul.f32 %v1292_v51, %v428_v58  ;;  %v442_v63 = vadd.f32 %v441_v59, %v188_v53 }
 0x160   :  { %v430_v2 = vadd.f32 %v1292_v51, %v429_v61  ;;  %1293 = vtanh.f32 %v442_v63 }
 0x162   :  { %v434_v5 = vsel %vm433_vm0, %v1292_v51, %v430_v2  ;;  %v190_v51 = vpop.f32.mrf.mxu2 }
 0x163   :  { %v439_v6 = vsel %vm436_vm1, %v438_v4, %v434_v5  ;;  %v191_v57 = vadd.f32 %v1617_v45, %v190_v51 }
 0x164   :  { %v444_v8 = vsub.f32 1.0, %v439_v6  ;;  %v446_v21 = vmul.f32 %v439_v6, %v1621_v9  ;;  %v92_v9 = vpop.f32.mrf.mxu0 }
 0x165   :  { %v93_v27 = vadd.f32 %v1594_v20, %v92_v9 }
 0x166   :  { %v1294_v11 = vpop.eup %1293 }
 0x167   :  { %v445_v12 = vmul.f32 %v1294_v11, %v444_v8 }
 0x169   :  { %v1684_v22 = vadd.f32 %v446_v21, %v445_v12 }
 0x16b   :  { %449 = vst.msk [vmem:[#allocation2 + $0x8] sm:$0xff] %vm223_vm9, %v1684_v22  ;;  %1234 = vmatmul.msk.f32.vlgmr.msra.gmra.mxu3 %vm223_vm9, %v1684_v22  ;;  %1236 = vmatmul.msk.f32.vlgmr.msrb.gmra.mxu0 %vm223_vm9, %v1684_v22 }
 0x16c   :  { %617 = vmatpush.msra.mxu3 %v1524_v14  ;;  %821 = vmatpush.msrb.mxu0 %v1508_v10  ;;  %v1706_v23 = vpop.f32.mrf.mxu0 }
 0x16e   :  { %618 = vmatpush.msra.mxu3 %v1538_v16  ;;  %822 = vmatpush.msrb.mxu0 %v1518_v13 }
 0x170   :  { %619 = vmatpush.msra.mxu3 %v1552_v18  ;;  %823 = vmatpush.msrb.mxu0 %v1530_v15 }
 0x172   :  { %620 = vmatpush.msra.mxu3 %v1561_v19  ;;  %824 = vmatpush.msrb.mxu0 %v1544_v17 }
 0x173   :  { %1235 = vmatmul.msk.f32.vlgmr.msrb.gmra.mxu3 %vm223_vm9, %v1684_v22 }
 0x174   :  { %801 = vmatpush.msrb.mxu3 %v1466_v0  ;;  %v1708_v24 = vpop.f32.mrf.mxu0 }
 0x176   :  { %802 = vmatpush.msrb.mxu3 %v1471_v1 }
 0x178   :  { %803 = vmatpush.msrb.mxu3 %v1480_v3 }
 0x17a   :  { %804 = vmatpush.msrb.mxu3 %v1495_v7 }
 0x17c   :  { %v1710_v26 = vpop.f32.mrf.mxu0 }
 0x184   :  { %v1713_v32 = vpop.f32.mrf.mxu0 }
 0x18c   :  { %v1716_v40 = vpop.f32.mrf.mxu0 }
 0x1e8   :  { %v510_v48 = vpop.f32.mrf.mxu0 }
 0x1e9   :  { %v511_v54 = vadd.f32 %v1612_v39, %v510_v48 }
 0x1ee   :  { %v470_v28 = vpop.f32.mrf.mxu3 }
 0x1ef   :  { %v513_v29 = vadd.f32 %v470_v28, %v93_v27 }
 0x1f1   :  { %v1237_v31 = vmul.f32 -1.442695, %v513_v29  ;;  %v193_v29 = vpop.f32.mrf.mxu2 }
 0x1f3   :  { %1295 = vpow2.f32 %v1237_v31 }
 0x1f6   :  { %v490_v34 = vpop.f32.mrf.mxu3 }
 0x1f7   :  { %v533_v35 = vadd.f32 %v490_v34, %v142_v33 }
 0x1f9   :  { %v1296_v36 = vpop.eup %1295  ;;  %v1238_v37 = vmul.f32 -1.442695, %v533_v35  ;;  %v1745_v31 = vpop.f32.mrf.mxu2 }
 0x1fa   :  { %v517_v38 = vadd.f32 1.0, %v1296_v36 }
 0x1fb   :  { %1297 = vpow2.f32 %v1238_v37 }
 0x1fc   :  { %1299 = vrcp.f32 %v517_v38  ;;  %v529_v47 = vand.u32 2147483648, %v517_v38  ;;  %v527_v50 = vand.u32 2147483647, %v517_v38  ;;  %vm523_vm3 = vweird.f32 %v517_v38 }
 0x1fe   :  { %v530_v55 = vor.u32 1.1754944e-38, %v529_v47  ;;  %vm528_vm5 = vcmp.eq.f32.partialorder %v527_v50, 8.507059e+37 }
 0x201   :  { %v1298_v41 = vpop.eup %1297  ;;  %v1749_v34 = vpop.f32.mrf.mxu2 }
 0x202   :  { %v1300_v42 = vpop.eup %1299  ;;  %v537_v43 = vadd.f32 1.0, %v1298_v41  ;;  %v96_v41 = vadd.f32 %v1594_v20, %v1706_v23 }
 0x203   :  { %v519_v44 = vmul.f32 %v1300_v42, %v517_v38  ;;  %vm524_vm2 = vweird.f32 %v1300_v42 }
 0x204   :  { %1301 = vrcp.f32 %v537_v43  ;;  %vm525_vm4 = vmor %vm523_vm3, %vm524_vm2  ;;  %v549_v62 = vand.u32 2147483648, %v537_v43  ;;  %v547_v2 = vand.u32 2147483647, %v537_v43  ;;  %vm543_vm7 = vweird.f32 %v537_v43 }
 0x205   :  { %v520_v46 = vsub.f32 1.0, %v519_v44 }
 0x206   :  { %v550_v6 = vor.u32 1.1754944e-38, %v549_v62  ;;  %vm548_vm10 = vcmp.eq.f32.partialorder %v547_v2, 8.507059e+37 }
 0x207   :  { %v521_v49 = vmul.f32 %v1300_v42, %v520_v46 }
 0x209   :  { %v522_v52 = vadd.f32 %v1300_v42, %v521_v49  ;;  %v1753_v36 = vpop.f32.mrf.mxu2 }
 0x20a   :  { %v1302_v53 = vpop.eup %1301 }
 0x20b   :  { %v539_v56 = vmul.f32 %v1302_v53, %v537_v43  ;;  %v526_v58 = vsel %vm525_vm4, %v1300_v42, %v522_v52  ;;  %vm544_vm6 = vweird.f32 %v1302_v53 }
 0x20c   :  { %v531_v59 = vsel %vm528_vm5, %v530_v55, %v526_v58  ;;  %vm545_vm8 = vmor %vm543_vm7, %vm544_vm6 }
 0x20d   :  { %v540_v60 = vsub.f32 1.0, %v539_v56  ;;  %v553_v61 = vmul.f32 %v531_v59, %v511_v54 }
 0x20f   :  { %v541_v63 = vmul.f32 %v1302_v53, %v540_v60  ;;  %v554_v4 = vadd.f32 %v553_v61, %v191_v57 }
 0x211   :  { %v542_v5 = vadd.f32 %v1302_v53, %v541_v63  ;;  %1303 = vtanh.f32 %v554_v4  ;;  %v1757_v38 = vpop.f32.mrf.mxu2 }
 0x213   :  { %v546_v8 = vsel %vm545_vm8, %v1302_v53, %v542_v5 }
 0x214   :  { %v551_v11 = vsel %vm548_vm10, %v550_v6, %v546_v8  ;;  %v194_v6 = vadd.f32 %v1617_v45, %v193_v29 }
 0x215   :  { %v556_v12 = vsub.f32 1.0, %v551_v11  ;;  %v558_v27 = vmul.f32 %v551_v11, %v1684_v22  ;;  %v144_v22 = vpop.f32.mrf.mxu1 }
 0x216   :  { %v145_v46 = vadd.f32 %v1600_v25, %v144_v22 }
 0x217   :  { %v1304_v21 = vpop.eup %1303 }
 0x218   :  { %v557_v9 = vmul.f32 %v1304_v21, %v556_v12 }
 0x21a   :  { %v1721_v28 = vadd.f32 %v558_v27, %v557_v9 }
 0x21c   :  { %561 = vst.msk [vmem:[#allocation2 + $0x10] sm:$0xff] %vm223_vm9, %v1721_v28  ;;  %1239 = vmatmul.msk.f32.vlgmr.msrb.gmra.mxu1 %vm223_vm9, %v1721_v28  ;;  %1240 = vmatmul.msk.f32.vlgmr.msrb.gmra.mxu2 %vm223_vm9, %v1721_v28 }
 0x21d   :  { %1241 = vmatmul.msk.f32.vlgmr.msra.gmra.mxu3 %vm223_vm9, %v1721_v28  ;;  %841 = vmatpush.msrb.mxu1 %v1524_v14  ;;  %v1743_v30 = vpop.f32.mrf.mxu1 }
 0x21e   :  { %913 = vmatpush.msrb.mxu2 %v1466_v0  ;;  %933 = vmatpush.msra.mxu3 %v1508_v10 }
 0x21f   :  { %842 = vmatpush.msrb.mxu1 %v1538_v16 }
 0x220   :  { %914 = vmatpush.msrb.mxu2 %v1471_v1  ;;  %934 = vmatpush.msra.mxu3 %v1518_v13 }
 0x221   :  { %843 = vmatpush.msrb.mxu1 %v1552_v18 }
 0x222   :  { %915 = vmatpush.msrb.mxu2 %v1480_v3  ;;  %935 = vmatpush.msra.mxu3 %v1530_v15 }
 0x223   :  { %844 = vmatpush.msrb.mxu1 %v1561_v19 }
 0x224   :  { %916 = vmatpush.msrb.mxu2 %v1495_v7  ;;  %936 = vmatpush.msra.mxu3 %v1544_v17 }
 0x225   :  { %v1747_v33 = vpop.f32.mrf.mxu1 }
 0x22d   :  { %v1751_v35 = vpop.f32.mrf.mxu1 }
 0x235   :  { %v1755_v37 = vpop.f32.mrf.mxu1 }
 0x299   :  { %v582_v42 = vpop.f32.mrf.mxu1 }
 0x29a   :  { %v625_v43 = vadd.f32 %v582_v42, %v96_v41 }
 0x29c   :  { %v1242_v44 = vmul.f32 -1.442695, %v625_v43 }
 0x29e   :  { %1305 = vpow2.f32 %v1242_v44 }
 0x29f   :  { %v602_v47 = vpop.f32.mrf.mxu2 }
 0x2a0   :  { %v645_v48 = vadd.f32 %v602_v47, %v145_v46  ;;  %v622_v60 = vpop.f32.mrf.mxu3 }
 0x2a1   :  { %v623_v4 = vadd.f32 %v1612_v39, %v622_v60 }
 0x2a2   :  { %v1243_v49 = vmul.f32 -1.442695, %v645_v48 }
 0x2a4   :  { %v1306_v50 = vpop.eup %1305  ;;  %1307 = vpow2.f32 %v1243_v49 }
 0x2a5   :  { %v629_v51 = vadd.f32 1.0, %v1306_v50 }
 0x2a7   :  { %1309 = vrcp.f32 %v629_v51  ;;  %v641_v23 = vand.u32 2147483648, %v629_v51  ;;  %v639_v58 = vand.u32 2147483647, %v629_v51  ;;  %vm635_vm12 = vweird.f32 %v629_v51 }
 0x2a9   :  { %v642_v63 = vor.u32 1.1754944e-38, %v641_v23  ;;  %vm640_vm14 = vcmp.eq.f32.partialorder %v639_v58, 8.507059e+37 }
 0x2aa   :  { %v1308_v52 = vpop.eup %1307 }
 0x2ab   :  { %v649_v53 = vadd.f32 1.0, %v1308_v52 }
 0x2ad   :  { %v1310_v54 = vpop.eup %1309  ;;  %1311 = vrcp.f32 %v649_v53  ;;  %v661_v12 = vand.u32 2147483648, %v649_v53  ;;  %v659_v9 = vand.u32 2147483647, %v649_v53  ;;  %vm655_vm0 = vweird.f32 %v649_v53 }
 0x2ae   :  { %v631_v55 = vmul.f32 %v1310_v54, %v629_v51  ;;  %vm636_vm11 = vweird.f32 %v1310_v54 }
 0x2af   :  { %vm637_vm13 = vmor %vm635_vm12, %vm636_vm11  ;;  %v662_v41 = vor.u32 1.1754944e-38, %v661_v12  ;;  %vm660_vm2 = vcmp.eq.f32.partialorder %v659_v9, 8.507059e+37 }
 0x2b0   :  { %v632_v56 = vsub.f32 1.0, %v631_v55 }
 0x2b2   :  { %v633_v57 = vmul.f32 %v1310_v54, %v632_v56 }
 0x2b3   :  { %v1312_v59 = vpop.eup %1311 }
 0x2b4   :  { %v651_v61 = vmul.f32 %v1312_v59, %v649_v53  ;;  %v634_v62 = vadd.f32 %v1310_v54, %v633_v57  ;;  %vm656_vm15 = vweird.f32 %v1312_v59 }
 0x2b5   :  { %vm657_vm1 = vmor %vm655_vm0, %vm656_vm15 }
 0x2b6   :  { %v652_v2 = vsub.f32 1.0, %v651_v61  ;;  %v638_v5 = vsel %vm637_vm13, %v1310_v54, %v634_v62 }
 0x2b7   :  { %v643_v8 = vsel %vm640_vm14, %v642_v63, %v638_v5  ;;  %v197_v5 = vadd.f32 %v1617_v45, %v1745_v31  ;;  %v151_v31 = vadd.f32 %v1600_v25, %v1747_v33 }
 0x2b8   :  { %v653_v11 = vmul.f32 %v1312_v59, %v652_v2  ;;  %v665_v21 = vmul.f32 %v643_v8, %v623_v4 }
 0x2ba   :  { %v654_v27 = vadd.f32 %v1312_v59, %v653_v11  ;;  %v666_v22 = vadd.f32 %v665_v21, %v194_v6 }
 0x2bc   :  { %v658_v42 = vsel %vm657_vm1, %v1312_v59, %v654_v27  ;;  %1313 = vtanh.f32 %v666_v22 }
 0x2bd   :  { %v663_v43 = vsel %vm660_vm2, %v662_v41, %v658_v42 }
 0x2be   :  { %v668_v44 = vsub.f32 1.0, %v663_v43  ;;  %v670_v29 = vmul.f32 %v663_v43, %v1721_v28 }
 0x2c2   :  { %v1314_v46 = vpop.eup %1313 }
 0x2c3   :  { %v669_v47 = vmul.f32 %v1314_v46, %v668_v44 }
 0x2c5   :  { %v1765_v48 = vadd.f32 %v670_v29, %v669_v47 }
 0x2c7   :  { %673 = vst.msk [vmem:[#allocation2 + $0x18] sm:$0xff] %vm223_vm9, %v1765_v48  ;;  %1244 = vmatmul.msk.f32.vlgmr.msra.gmra.mxu0 %vm223_vm9, %v1765_v48  ;;  %1245 = vmatmul.msk.f32.vlgmr.msra.gmra.mxu1 %vm223_vm9, %v1765_v48 }
 0x2c8   :  { %1246 = vmatmul.msk.f32.vlgmr.msra.gmra.mxu2 %vm223_vm9, %v1765_v48  ;;  %953 = vmatpush.msra.mxu0 %v1524_v14 }
 0x2c9   :  { %1025 = vmatpush.msra.mxu1 %v1466_v0  ;;  %1045 = vmatpush.msra.mxu2 %v1508_v10  ;;  %v99_v0 = vadd.f32 %v1594_v20, %v1708_v24 }
 0x2ca   :  { %954 = vmatpush.msra.mxu0 %v1538_v16 }
 0x2cb   :  { %1026 = vmatpush.msra.mxu1 %v1471_v1  ;;  %1046 = vmatpush.msra.mxu2 %v1518_v13  ;;  %v148_v1 = vadd.f32 %v1600_v25, %v1743_v30 }
 0x2cc   :  { %955 = vmatpush.msra.mxu0 %v1552_v18 }
 0x2cd   :  { %1027 = vmatpush.msra.mxu1 %v1480_v3  ;;  %1047 = vmatpush.msra.mxu2 %v1530_v15 }
 0x2ce   :  { %956 = vmatpush.msra.mxu0 %v1561_v19 }
 0x2cf   :  { %1028 = vmatpush.msra.mxu1 %v1495_v7  ;;  %1048 = vmatpush.msra.mxu2 %v1544_v17 }
 0x344   :  { %v694_v10 = vpop.f32.mrf.mxu0  ;;  %v714_v13 = vpop.f32.mrf.mxu1 }
 0x345   :  { %v737_v28 = vadd.f32 %v694_v10, %v99_v0  ;;  %v757_v49 = vadd.f32 %v714_v13, %v148_v1 }
 0x347   :  { %v1247_v50 = vmul.f32 -1.442695, %v737_v28  ;;  %v1248_v3 = vmul.f32 -1.442695, %v757_v49 }
 0x349   :  { %1315 = vpow2.f32 %v1247_v50 }
 0x34a   :  { %1317 = vpow2.f32 %v1248_v3 }
 0x34b   :  { %v734_v59 = vpop.f32.mrf.mxu2 }
 0x34c   :  { %v735_v62 = vadd.f32 %v1612_v39, %v734_v59 }
 0x34f   :  { %v1316_v15 = vpop.eup %1315 }
 0x350   :  { %v1318_v51 = vpop.eup %1317  ;;  %v741_v52 = vadd.f32 1.0, %v1316_v15 }
 0x351   :  { %v761_v7 = vadd.f32 1.0, %v1318_v51 }
 0x352   :  { %1319 = vrcp.f32 %v741_v52  ;;  %v753_v56 = vand.u32 2147483648, %v741_v52  ;;  %v751_v57 = vand.u32 2147483647, %v741_v52  ;;  %vm747_vm4 = vweird.f32 %v741_v52 }
 0x353   :  { %1321 = vrcp.f32 %v761_v7  ;;  %v773_v6 = vand.u32 2147483648, %v761_v7  ;;  %vm767_vm8 = vweird.f32 %v761_v7  ;;  %v771_v11 = vand.u32 2147483647, %v761_v7 }
 0x354   :  { %v754_v61 = vor.u32 1.1754944e-38, %v753_v56  ;;  %vm752_vm6 = vcmp.eq.f32.partialorder %v751_v57, 8.507059e+37  ;;  %v200_v56 = vadd.f32 %v1617_v45, %v1749_v34  ;;  %v105_v34 = vadd.f32 %v1594_v20, %v1713_v32 }
 0x355   :  { %v774_v9 = vor.u32 1.1754944e-38, %v773_v6  ;;  %vm772_vm11 = vcmp.eq.f32.partialorder %v771_v11, 8.507059e+37 }
 0x358   :  { %v1320_v17 = vpop.eup %1319 }
 0x359   :  { %v1322_v53 = vpop.eup %1321  ;;  %v743_v24 = vmul.f32 %v1320_v17, %v741_v52  ;;  %vm748_vm3 = vweird.f32 %v1320_v17 }
 0x35a   :  { %v763_v54 = vmul.f32 %v1322_v53, %v761_v7  ;;  %vm749_vm5 = vmor %vm747_vm4, %vm748_vm3  ;;  %vm768_vm7 = vweird.f32 %v1322_v53 }
 0x35b   :  { %v744_v55 = vsub.f32 1.0, %v743_v24  ;;  %vm769_vm10 = vmor %vm767_vm8, %vm768_vm7 }
 0x35c   :  { %v764_v30 = vsub.f32 1.0, %v763_v54 }
 0x35d   :  { %v745_v23 = vmul.f32 %v1320_v17, %v744_v55 }
 0x35e   :  { %v765_v58 = vmul.f32 %v1322_v53, %v764_v30 }
 0x35f   :  { %v746_v60 = vadd.f32 %v1320_v17, %v745_v23 }
 0x360   :  { %v766_v2 = vadd.f32 %v1322_v53, %v765_v58 }
 0x361   :  { %v750_v63 = vsel %vm749_vm5, %v1320_v17, %v746_v60 }
 0x362   :  { %v755_v4 = vsel %vm752_vm6, %v754_v61, %v750_v63  ;;  %v770_v21 = vsel %vm769_vm10, %v1322_v53, %v766_v2 }
 0x363   :  { %v777_v8 = vmul.f32 %v755_v4, %v735_v62  ;;  %v775_v27 = vsel %vm772_vm11, %v774_v9, %v770_v21 }
 0x364   :  { %v780_v22 = vsub.f32 1.0, %v775_v27  ;;  %v782_v43 = vmul.f32 %v775_v27, %v1765_v48  ;;  %v102_v48 = vadd.f32 %v1594_v20, %v1710_v26 }
 0x365   :  { %v778_v12 = vadd.f32 %v777_v8, %v197_v5  ;;  %v154_v8 = vadd.f32 %v1600_v25, %v1751_v35 }
 0x367   :  { %1323 = vtanh.f32 %v778_v12 }
 0x36d   :  { %v1324_v41 = vpop.eup %1323 }
 0x36e   :  { %v781_v42 = vmul.f32 %v1324_v41, %v780_v22 }
 0x370   :  { %v783_v44 = vadd.f32 %v782_v43, %v781_v42 }
 0x372   :  { %785 = vst.msk [vmem:[#allocation2 + $0x20] sm:$0xff] %vm223_vm9, %v783_v44  ;;  %1249 = vmatmul.msk.f32.vlgmr.msrb.gmra.mxu3 %vm223_vm9, %v783_v44  ;;  %1250 = vmatmul.msk.f32.vlgmr.msrb.gmra.mxu0 %vm223_vm9, %v783_v44 }
 0x373   :  { %1251 = vmatmul.msk.f32.vlgmr.msrb.gmra.mxu1 %vm223_vm9, %v783_v44  ;;  %1065 = vmatpush.msrb.mxu3 %v1524_v14 }
 0x375   :  { %1066 = vmatpush.msrb.mxu3 %v1538_v16 }
 0x377   :  { %1067 = vmatpush.msrb.mxu3 %v1552_v18 }
 0x379   :  { %1068 = vmatpush.msrb.mxu3 %v1561_v19 }
 0x3ef   :  { %v826_v46 = vpop.f32.mrf.mxu0 }
 0x3f0   :  { %v869_v47 = vadd.f32 %v826_v46, %v151_v31  ;;  %v846_v7 = vpop.f32.mrf.mxu1 }
 0x3f1   :  { %v847_v24 = vadd.f32 %v1612_v39, %v846_v7 }
 0x3f2   :  { %v1253_v29 = vmul.f32 -1.442695, %v869_v47 }
 0x3f4   :  { %1325 = vpow2.f32 %v1253_v29 }
 0x3f5   :  { %v806_v0 = vpop.f32.mrf.mxu3 }
 0x3f6   :  { %v849_v1 = vadd.f32 %v806_v0, %v102_v48 }
 0x3f8   :  { %v1252_v10 = vmul.f32 -1.442695, %v849_v1 }
 0x3fa   :  { %v1326_v14 = vpop.eup %1325  ;;  %1327 = vpow2.f32 %v1252_v10 }
 0x3fb   :  { %v873_v16 = vadd.f32 1.0, %v1326_v14 }
 0x3fd   :  { %1329 = vrcp.f32 %v873_v16  ;;  %v885_v23 = vand.u32 2147483648, %v873_v16  ;;  %vm879_vm1 = vweird.f32 %v873_v16  ;;  %v883_v58 = vand.u32 2147483647, %v873_v16 }
 0x3ff   :  { %v886_v61 = vor.u32 1.1754944e-38, %v885_v23  ;;  %vm884_vm3 = vcmp.eq.f32.partialorder %v883_v58, 8.507059e+37  ;;  %v1125_v58 = vld [vmem:[%s1876_s5 + $0x18] sm:$0xff] }
 0x400   :  { %v1328_v18 = vpop.eup %1327  ;;  %1145 = vmatpush.msrb.mxu0 %v1125_v58 }
 0x401   :  { %v853_v13 = vadd.f32 1.0, %v1328_v18 }
 0x403   :  { %1331 = vrcp.f32 %v853_v13  ;;  %v1330_v19 = vpop.eup %1329  ;;  %v865_v15 = vand.u32 2147483648, %v853_v13  ;;  %v863_v26 = vand.u32 2147483647, %v853_v13  ;;  %vm859_vm13 = vweird.f32 %v853_v13 }
 0x404   :  { %v875_v28 = vmul.f32 %v1330_v19, %v873_v16  ;;  %vm880_vm0 = vweird.f32 %v1330_v19 }
 0x405   :  { %v866_v53 = vor.u32 1.1754944e-38, %v865_v15  ;;  %vm864_vm15 = vcmp.eq.f32.partialorder %v863_v26, 8.507059e+37  ;;  %vm881_vm2 = vmor %vm879_vm1, %vm880_vm0 }
 0x406   :  { %v876_v50 = vsub.f32 1.0, %v875_v28  ;;  %v203_v28 = vadd.f32 %v1617_v45, %v1753_v36  ;;  %v1357_v45 = vld [vmem:[%s1874_s3] ss:$0 sm:$0xff] }
 0x407   :  { %v108_v36 = vadd.f32 %v1357_v45, %v1716_v40  ;;  %v1124_v40 = vld [vmem:[%s1876_s5 + $0x10] sm:$0xff] }
 0x408   :  { %v877_v52 = vmul.f32 %v1330_v19, %v876_v50  ;;  %1146 = vmatpush.msrb.mxu0 %v1124_v40 }
 0x409   :  { %v1332_v33 = vpop.eup %1331 }
 0x40a   :  { %v855_v49 = vmul.f32 %v1332_v33, %v853_v13  ;;  %vm860_vm12 = vweird.f32 %v1332_v33  ;;  %v878_v55 = vadd.f32 %v1330_v19, %v877_v52 }
 0x40b   :  { %vm861_vm14 = vmor %vm859_vm13, %vm860_vm12 }
 0x40c   :  { %v856_v3 = vsub.f32 1.0, %v855_v49  ;;  %v882_v60 = vsel %vm881_vm2, %v1330_v19, %v878_v55 }
 0x40d   :  { %v887_v62 = vsel %vm884_vm3, %v886_v61, %v882_v60  ;;  %v1123_v60 = vld [vmem:[%s1876_s5 + $0x8] sm:$0xff] }
 0x40e   :  { %v857_v51 = vmul.f32 %v1332_v33, %v856_v3  ;;  %v892_v63 = vsub.f32 1.0, %v887_v62  ;;  %v894_v5 = vmul.f32 %v887_v62, %v783_v44  ;;  %1147 = vmatpush.msrb.mxu0 %v1123_v60 }
 0x410   :  { %v858_v17 = vadd.f32 %v1332_v33, %v857_v51 }
 0x412   :  { %v862_v54 = vsel %vm861_vm14, %v1332_v33, %v858_v17 }
 0x413   :  { %v867_v30 = vsel %vm864_vm15, %v866_v53, %v862_v54 }
 0x414   :  { %v889_v57 = vmul.f32 %v867_v30, %v847_v24  ;;  %v1358_v30 = vld [vmem:[%s1874_s3 + $0x1] ss:$0 sm:$0xff] }
 0x416   :  { %v890_v59 = vadd.f32 %v889_v57, %v200_v56  ;;  %v157_v56 = vadd.f32 %v1358_v30, %v1755_v37  ;;  %v1122_v37 = vld [vmem:[%s1876_s5] sm:$0xff] }
 0x417   :  { %1148 = vmatpush.msrb.mxu0 %v1122_v37 }
 0x418   :  { %1333 = vtanh.f32 %v890_v59 }
 0x41e   :  { %v1334_v2 = vpop.eup %1333 }
 0x41f   :  { %v893_v4 = vmul.f32 %v1334_v2, %v892_v63 }
 0x421   :  { %v895_v6 = vadd.f32 %v894_v5, %v893_v4 }
 0x423   :  { %897 = vst.msk [vmem:[#allocation2 + $0x28] sm:$0xff] %vm223_vm9, %v895_v6  ;;  %1254 = vmatmul.msk.f32.vlgmr.msrb.gmra.mxu2 %vm223_vm9, %v895_v6  ;;  %1255 = vmatmul.msk.f32.vlgmr.msra.gmra.mxu3 %vm223_vm9, %v895_v6 }
 0x424   :  { %1256 = vmatmul.msk.f32.vlgmr.msra.gmra.mxu0 %vm223_vm9, %v895_v6 }
 0x4a1   :  { %v958_v0 = vpop.f32.mrf.mxu0 }
 0x4a2   :  { %v959_v16 = vadd.f32 %v1612_v39, %v958_v0 }
 0x4a6   :  { %v918_v11 = vpop.f32.mrf.mxu2  ;;  %v938_v12 = vpop.f32.mrf.mxu3 }
 0x4a7   :  { %v961_v21 = vadd.f32 %v918_v11, %v105_v34  ;;  %v981_v9 = vadd.f32 %v938_v12, %v154_v8 }
 0x4a9   :  { %v1257_v27 = vmul.f32 -1.442695, %v961_v21  ;;  %v1258_v22 = vmul.f32 -1.442695, %v981_v9 }
 0x4ab   :  { %1335 = vpow2.f32 %v1257_v27 }
 0x4ac   :  { %1337 = vpow2.f32 %v1258_v22 }
 0x4b1   :  { %v1336_v41 = vpop.eup %1335 }
 0x4b2   :  { %v1338_v42 = vpop.eup %1337  ;;  %v965_v43 = vadd.f32 1.0, %v1336_v41 }
 0x4b3   :  { %v985_v44 = vadd.f32 1.0, %v1338_v42  ;;  %v1359_v42 = vld [vmem:[%s1875_s4] ss:$0 sm:$0xff] }
 0x4b4   :  { %1339 = vrcp.f32 %v965_v43  ;;  %v977_v25 = vand.u32 2147483648, %v965_v43  ;;  %v975_v48 = vand.u32 2147483647, %v965_v43  ;;  %vm971_vm5 = vweird.f32 %v965_v43 }
 0x4b5   :  { %1341 = vrcp.f32 %v985_v44  ;;  %v997_v49 = vand.u32 2147483648, %v985_v44  ;;  %vm991_vm10 = vweird.f32 %v985_v44  ;;  %v995_v50 = vand.u32 2147483647, %v985_v44 }
 0x4b6   :  { %v978_v14 = vor.u32 1.1754944e-38, %v977_v25  ;;  %vm976_vm7 = vcmp.eq.f32.partialorder %v975_v48, 8.507059e+37 }
 0x4b7   :  { %v998_v51 = vor.u32 1.1754944e-38, %v997_v49  ;;  %vm996_vm12 = vcmp.eq.f32.partialorder %v995_v50, 8.507059e+37 }
 0x4ba   :  { %v1340_v31 = vpop.eup %1339 }
 0x4bb   :  { %v1342_v46 = vpop.eup %1341  ;;  %v967_v20 = vmul.f32 %v1340_v31, %v965_v43  ;;  %vm972_vm4 = vweird.f32 %v1340_v31 }
 0x4bc   :  { %v987_v32 = vmul.f32 %v1342_v46, %v985_v44  ;;  %vm973_vm6 = vmor %vm971_vm5, %vm972_vm4  ;;  %vm992_vm8 = vweird.f32 %v1342_v46 }
 0x4bd   :  { %v968_v47 = vsub.f32 1.0, %v967_v20  ;;  %vm993_vm11 = vmor %vm991_vm10, %vm992_vm8 }
 0x4be   :  { %v988_v35 = vsub.f32 1.0, %v987_v32 }
 0x4bf   :  { %v969_v29 = vmul.f32 %v1340_v31, %v968_v47 }
 0x4c0   :  { %v989_v1 = vmul.f32 %v1342_v46, %v988_v35 }
 0x4c1   :  { %v970_v10 = vadd.f32 %v1340_v31, %v969_v29 }
 0x4c2   :  { %v990_v19 = vadd.f32 %v1342_v46, %v989_v1 }
 0x4c3   :  { %v974_v18 = vsel %vm973_vm6, %v1340_v31, %v970_v10  ;;  %v1360_v31 = vld [vmem:[%s1874_s3 + $0x2] ss:$0 sm:$0xff]  ;;  %s1414_s3 = smov [#allocation2]  }
 0x4c4   :  { %v979_v13 = vsel %vm976_vm7, %v978_v14, %v974_v18  ;;  %v994_v15 = vsel %vm993_vm11, %v1342_v46, %v990_v19  ;;  %v206_v46 = vadd.f32 %v1360_v31, %v1757_v38  ;;  %s1159_s4 = sshll.u32 %s1414_s3, 4  ;;  %v1274_v19 = vld [vmem:[%s1877_s6] ss:$0 sm:$0xff]  ;;  %s1160_s4 = int_to_ptr.vmem [resolvable:$true] %s1159_s4 }
 0x4c5   :  { %v1001_v33 = vmul.f32 %v979_v13, %v959_v16  ;;  %v999_v26 = vsel %vm996_vm12, %v998_v51, %v994_v15 }
 0x4c6   :  { %v1004_v39 = vsub.f32 1.0, %v999_v26  ;;  %v1006_v17 = vmul.f32 %v999_v26, %v895_v6 }
 0x4c7   :  { %v1002_v3 = vadd.f32 %v1001_v33, %v203_v28 }
 0x4c9   :  { %1343 = vtanh.f32 %v1002_v3 }
 0x4cf   :  { %v1344_v52 = vpop.eup %1343 }
 0x4d0   :  { %v1005_v7 = vmul.f32 %v1344_v52, %v1004_v39 }
 0x4d2   :  { %v1821_v53 = vadd.f32 %v1006_v17, %v1005_v7 }
 0x4d4   :  { %1009 = vst.msk [vmem:[#allocation2 + $0x30] sm:$0xff] %vm223_vm9, %v1821_v53  ;;  %1259 = vmatmul.msk.f32.vlgmr.msra.gmra.mxu1 %vm223_vm9, %v1821_v53  ;;  %1260 = vmatmul.msk.f32.vlgmr.msra.gmra.mxu2 %vm223_vm9, %v1821_v53 }
 0x4d5   :  { %1261 = vmatmul.msk.f32.vlgmr.msrb.gmra.mxu3 %vm223_vm9, %v1821_v53 }
 0x551   :  { %v1030_v24 = vpop.f32.mrf.mxu1 }
 0x552   :  { %v1073_v54 = vadd.f32 %v1030_v24, %v108_v36 }
 0x554   :  { %v1262_v55 = vmul.f32 -1.442695, %v1073_v54 }
 0x556   :  { %1345 = vpow2.f32 %v1262_v55 }
 0x557   :  { %v1050_v23 = vpop.f32.mrf.mxu2 }
 0x558   :  { %v1093_v57 = vadd.f32 %v1050_v23, %v157_v56  ;;  %v1070_v21 = vpop.f32.mrf.mxu3 }
 0x559   :  { %v1071_v43 = vadd.f32 %v1359_v42, %v1070_v21 }
 0x55a   :  { %v1263_v59 = vmul.f32 -1.442695, %v1093_v57 }
 0x55c   :  { %v1346_v61 = vpop.eup %1345  ;;  %1347 = vpow2.f32 %v1263_v59 }
 0x55d   :  { %v1077_v62 = vadd.f32 1.0, %v1346_v61 }
 0x55f   :  { %1349 = vrcp.f32 %v1077_v62  ;;  %v1089_v34 = vand.u32 2147483648, %v1077_v62  ;;  %v1087_v11 = vand.u32 2147483647, %v1077_v62  ;;  %vm1083_vm14 = vweird.f32 %v1077_v62 }
 0x561   :  { %v1090_v22 = vor.u32 1.1754944e-38, %v1089_v34  ;;  %vm1088_vm0 = vcmp.eq.f32.partialorder %v1087_v11, 8.507059e+37 }
 0x562   :  { %v1348_v63 = vpop.eup %1347 }
 0x563   :  { %v1097_v2 = vadd.f32 1.0, %v1348_v63 }
 0x565   :  { %v1350_v4 = vpop.eup %1349  ;;  %1351 = vrcp.f32 %v1097_v2  ;;  %v1109_v47 = vand.u32 2147483648, %v1097_v2  ;;  %v1107_v35 = vand.u32 2147483647, %v1097_v2  ;;  %vm1103_vm2 = vweird.f32 %v1097_v2 }
 0x566   :  { %v1079_v5 = vmul.f32 %v1350_v4, %v1077_v62  ;;  %vm1084_vm13 = vweird.f32 %v1350_v4 }
 0x567   :  { %vm1085_vm15 = vmor %vm1083_vm14, %vm1084_vm13  ;;  %v1110_v0 = vor.u32 1.1754944e-38, %v1109_v47  ;;  %vm1108_vm4 = vcmp.eq.f32.partialorder %v1107_v35, 8.507059e+37 }
 0x568   :  { %v1080_v6 = vsub.f32 1.0, %v1079_v5 }
 0x56a   :  { %v1081_v8 = vmul.f32 %v1350_v4, %v1080_v6 }
 0x56b   :  { %v1352_v12 = vpop.eup %1351 }
 0x56c   :  { %v1099_v9 = vmul.f32 %v1352_v12, %v1097_v2  ;;  %v1082_v27 = vadd.f32 %v1350_v4, %v1081_v8  ;;  %vm1104_vm1 = vweird.f32 %v1352_v12 }
 0x56d   :  { %vm1105_vm3 = vmor %vm1103_vm2, %vm1104_vm1 }
 0x56e   :  { %v1100_v41 = vsub.f32 1.0, %v1099_v9  ;;  %v1086_v44 = vsel %vm1085_vm15, %v1350_v4, %v1082_v27 }
 0x56f   :  { %v1091_v20 = vsel %vm1088_vm0, %v1090_v22, %v1086_v44 }
 0x570   :  { %v1101_v32 = vmul.f32 %v1352_v12, %v1100_v41  ;;  %v1113_v25 = vmul.f32 %v1091_v20, %v1071_v43 }
 0x572   :  { %v1102_v29 = vadd.f32 %v1352_v12, %v1101_v32  ;;  %v1114_v48 = vadd.f32 %v1113_v25, %v206_v46 }
 0x574   :  { %v1106_v1 = vsel %vm1105_vm3, %v1352_v12, %v1102_v29  ;;  %1353 = vtanh.f32 %v1114_v48 }
 0x575   :  { %v1111_v10 = vsel %vm1108_vm4, %v1110_v0, %v1106_v1 }
 0x576   :  { %v1116_v14 = vsub.f32 1.0, %v1111_v10  ;;  %v1118_v38 = vmul.f32 %v1111_v10, %v1821_v53 }
 0x57a   :  { %v1354_v16 = vpop.eup %1353 }
 0x57b   :  { %v1117_v18 = vmul.f32 %v1354_v16, %v1116_v14 }
 0x57d   :  { %v1119_v13 = vadd.f32 %v1118_v38, %v1117_v18 }
 0x57f   :  { %1121 = vst.msk [vmem:[#allocation2 + $0x38] sm:$0xff] %vm223_vm9, %v1119_v13  ;;  %1264 = vmatmul.msk.f32.vlgmr.msrb.gmra.mxu0 %vm223_vm9, %v1119_v13 }
 0x580   :  { %1167 = dma.vmem_to_hbm [thread:$0]  %s1160_s4, 1024, %s1162_s1, [#allocation3], %s1415_s11, %s1415_s11, %s1416_s12  }
 0x5fc   :  { %v1150_v28 = vpop.f32.mrf.mxu0 }
 0x5fd   :  { %v1151_v33 = vadd.f32 %v1274_v19, %v1150_v28 }
 0x5ff   :  { %1355 = vtanh.f32 %v1151_v33 }
 0x605   :  { %v1356_v49 = vpop.eup %1355 }
 0x606   :  { %1154 = vst.msk [vmem:[#allocation4] sm:$0xff] %vm223_vm9, %v1356_v49 }
 0x607   :  { %1178 = dma.vmem_to_hbm [thread:$0]  %s1174_s16, 128, %s1176_s18, [#allocation5]  }
 0x608   :  { %1409 = dma.done.wait [#allocation3], 1024  }
 0x609   :  { %1410 = vsyncadd [#allocation3], 4294966272 }
 0x60a   :  { %1411 = dma.done.wait [#allocation5], 128  }
 0x60b   :  { %1412 = vsyncadd [#allocation5], 4294967168 }
 0x60c   :  { %1187 = vsyncpa [#allocation3], 1 }
 0x60d   :  { %1188 = vsyncpa [#allocation5], 1 }

</bundles_post_ra>
